<compile_context>
chip_gen: v7x
topology: tpu7x:2x2x1
jax: 0.10.0
libtpu: 0.0.40
codegen_flags: <defaults>
</compile_context>

<pallas_src>
import functools

import jax
import jax.numpy as jnp
from jax import lax
from jax.experimental import pallas as pl
from jax.experimental.pallas import tpu as pltpu

BN_EPS = 1e-5
_VMEM_LIMIT_BYTES = 64 * 1024 * 1024      # compiler cap (v5e/v6e: 128 MiB phys, v7x: 64 MiB)
_FUSED_VMEM_BUDGET = 40 * 1024 * 1024     # conservative working-set bound for the fused path


def _round_up(x, m):
    return (x + m - 1) // m * m


# ---------------------------------------------------------------------------
# Fused kernel: grid = (2 phases, n_tiles batch tiles)
#   phase 0: h = x @ W1 ; per-feature [sum, sum_sq] on the MXU ; h -> VMEM
#            (at the last tile: fold BN into scale/shift, rsqrt on the EUP)
#   phase 1: out = relu(h * scale + shift) @ W2 + b2
# ---------------------------------------------------------------------------
def _fused_kernel(x_ref, w1_ref, gamma_ref, beta_ref, w2_ref, b2_ref, o_ref,
                  h_vmem, sum_vmem, sq_vmem, scale_vmem, shift_vmem,
                  *, n_valid, block_n, n_tiles, compute_dtype):
    p = pl.program_id(0)          # phase
    i = pl.program_id(1)          # batch tile

    @pl.when(p == 0)
    def _phase_fc1_stats():
        @pl.when(i == 0)
        def _init():
            sum_vmem[...] = jnp.zeros_like(sum_vmem)
            sq_vmem[...] = jnp.zeros_like(sq_vmem)

        x = x_ref[...].astype(compute_dtype)          # in-kernel cast to MXU dtype
        h = jnp.dot(x, w1_ref[...], preferred_element_type=jnp.float32)
        # fc1 bias intentionally omitted: training-mode BN subtracts the batch
        # mean (which contains b1 exactly) and the variance is shift-invariant.

        if n_valid % block_n:
            # Zero rows past the true batch (partial last tile / OOB garbage)
            # so they cannot pollute the statistics or the h scratch.
            row = i * block_n + lax.broadcasted_iota(jnp.int32, (block_n, 1), 0)
            h = jnp.where(row < n_valid, h, 0.0)

        # Batch reduction on the MXU (keeps the XLU free): ones-row matmuls
        # give 8 identical rows of per-feature partial sums, exact in f32.
        ones = jnp.ones((8, block_n), jnp.float32)
        sum_vmem[...] += jnp.dot(ones, h, preferred_element_type=jnp.float32)
        sq_vmem[...] += jnp.dot(ones, h * h, preferred_element_type=jnp.float32)

        h_vmem[i] = h                                  # f32, resident across phases

        @pl.when(i == n_tiles - 1)
        def _finalize_bn():
            inv_n = 1.0 / n_valid
            mean = sum_vmem[0:1, :] * inv_n
            # TODO(synk): E[h^2]-E[h]^2 in f32 with a >=0 clamp; a two-pass /
            #             Welford form would be more robust for badly centered h.
            var = jnp.maximum(sq_vmem[0:1, :] * inv_n - mean * mean, 0.0)
            scale = gamma_ref[...] * lax.rsqrt(var + BN_EPS)    # EUP, computed once
            scale_vmem[...] = scale
            shift_vmem[...] = beta_ref[...] - mean * scale

    @pl.when(p == 1)
    def _phase_bn_relu_fc2():
        a = jnp.maximum(h_vmem[i] * scale_vmem[...] + shift_vmem[...], 0.0)
        out = jnp.dot(a.astype(compute_dtype), w2_ref[...],
                      preferred_element_type=jnp.float32) + b2_ref[...]
        o_ref[...] = out.astype(o_ref.dtype)


# ---------------------------------------------------------------------------
# Two-kernel fallback (very large batches: h scratch would not fit VMEM)
# ---------------------------------------------------------------------------
def _fc1_stats_kernel(x_ref, w1_ref, h_ref, stats_ref, *, n_valid, block_n,
                      compute_dtype):
    i = pl.program_id(0)
    x = x_ref[...].astype(compute_dtype)
    h = jnp.dot(x, w1_ref[...], preferred_element_type=jnp.float32)
    if n_valid % block_n:
        row = i * block_n + lax.broadcasted_iota(jnp.int32, (block_n, 1), 0)
        h = jnp.where(row < n_valid, h, 0.0)
    ones = jnp.ones((8, block_n), jnp.float32)
    hsz = h.shape[1]
    # Per-tile partial stats (no cross-tile accumulator) -> N axis can be
    # "parallel" (megacore on v7x); partials are summed in tiny JAX glue.
    stats_ref[0, :, :hsz] = jnp.dot(ones, h, preferred_element_type=jnp.float32)
    stats_ref[0, :, hsz:] = jnp.dot(ones, h * h, preferred_element_type=jnp.float32)
    h_ref[...] = h.astype(h_ref.dtype)


def _bn_relu_fc2_kernel(h_ref, scale_ref, shift_ref, w2_ref, b2_ref, o_ref):
    a = jnp.maximum(h_ref[...].astype(jnp.float32) * scale_ref[...] + shift_ref[...], 0.0)
    out = jnp.dot(a.astype(w2_ref.dtype), w2_ref[...],
                  preferred_element_type=jnp.float32) + b2_ref[...]
    o_ref[...] = out.astype(o_ref.dtype)


# ---------------------------------------------------------------------------
# One-time parameter preparation (hoisted out of the per-call path)
# ---------------------------------------------------------------------------
def prepare_params(params, compute_dtype=jnp.bfloat16):
    """Pad/cast the weights to lane-dense (x128) layouts once, at init time."""
    w1, w2 = params["w1"], params["w2"]
    gamma, beta, b2 = params["gamma"], params["beta"], params["b2"]
    din, hdim = w1.shape
    dout = w2.shape[1]
    hp = _round_up(hdim, 128)
    doutp = _round_up(dout, 128)
    f32 = jnp.float32
    return {
        # K dim of W1 stays at the true input_dim (full-extent block; the MXU
        # pads K internally), so x needs no pad/cast pass in the wrapper.
        "w1": jnp.zeros((din, hp), compute_dtype).at[:, :hdim].set(w1.astype(compute_dtype)),
        "gamma": jnp.ones((1, hp), f32).at[0, :hdim].set(gamma.astype(f32)),
        "beta": jnp.zeros((1, hp), f32).at[0, :hdim].set(beta.astype(f32)),
        "w2": jnp.zeros((hp, doutp), compute_dtype).at[:hdim, :dout].set(w2.astype(compute_dtype)),
        "b2": jnp.zeros((1, doutp), f32).at[0, :dout].set(b2.astype(f32)),
        # params["b1"] intentionally unused (absorbed exactly by training-mode BN).
    }


# ---------------------------------------------------------------------------
# Forward wrapper
# ---------------------------------------------------------------------------
def predictor_forward(x, prepared, *, out_dim, compute_dtype=jnp.bfloat16,
                      block_n=512, fuse=None):
    """Fused Predictor forward.  x: (N, input_dim) f32; prepared: prepare_params()."""
    w1, gamma, beta = prepared["w1"], prepared["gamma"], prepared["beta"]
    w2, b2 = prepared["w2"], prepared["b2"]

    n, din = x.shape
    hp = w1.shape[1]
    doutp = w2.shape[1]
    out_dtype = x.dtype
    f32 = jnp.float32
    csize = jnp.dtype(compute_dtype).itemsize
    osize = jnp.dtype(out_dtype).itemsize

    block_n = max(8, min(_round_up(block_n, 8), _round_up(n, 8)))
    n_tiles = pl.cdiv(n, block_n)

    if fuse is None:   # auto: fuse whenever the h scratch + working set fits VMEM
        est = (2 * block_n * din * 4 + din * hp * csize + hp * doutp * csize
               + n_tiles * block_n * hp * 4 + 2 * block_n * doutp * osize
               + 64 * hp * 4)
        fuse = est <= _FUSED_VMEM_BUDGET

    if fuse:
        cost = pl.CostEstimate(
            flops=(2 * n * din * hp + 2 * n * hp * doutp
                   + 4 * 8 * n_tiles * block_n * hp + 8 * n * hp),
            transcendentals=hp,
            bytes_accessed=(n * din * 4 + din * hp * csize + hp * doutp * csize
                            + n * doutp * osize + 4 * hp * 4 + doutp * 4))
        out = pl.pallas_call(
            functools.partial(_fused_kernel, n_valid=n, block_n=block_n,
                              n_tiles=n_tiles, compute_dtype=compute_dtype),
            grid=(2, n_tiles),
            in_specs=[
                # x: tiled over the batch in phase 0; parked on the last-fetched
                # block during phase 1 so x is not re-read from HBM.
                pl.BlockSpec((block_n, din),
                             lambda p, i: (i * (1 - p) + (n_tiles - 1) * p, 0)),
                pl.BlockSpec((din, hp), lambda p, i: (0, 0),
                             pipeline_mode=pl.Buffered(1)),
                pl.BlockSpec((1, hp), lambda p, i: (0, 0),
                             pipeline_mode=pl.Buffered(1)),
                pl.BlockSpec((1, hp), lambda p, i: (0, 0),
                             pipeline_mode=pl.Buffered(1)),
                pl.BlockSpec((hp, doutp), lambda p, i: (0, 0),
                             pipeline_mode=pl.Buffered(1)),
                pl.BlockSpec((1, doutp), lambda p, i: (0, 0),
                             pipeline_mode=pl.Buffered(1)),
            ],
            # Output block index pinned to 0 during phase 0, so nothing is
            # written back to HBM before phase 1 has produced real data.
            out_specs=pl.BlockSpec((block_n, doutp), lambda p, i: (i * p, 0)),
            out_shape=jax.ShapeDtypeStruct((n, doutp), out_dtype),
            scratch_shapes=[
                pltpu.VMEM((n_tiles, block_n, hp), f32),   # h (resident across phases)
                pltpu.VMEM((8, hp), f32),                  # sum(h)
                pltpu.VMEM((8, hp), f32),                  # sum(h*h)
                pltpu.VMEM((1, hp), f32),                  # BN scale
                pltpu.VMEM((1, hp), f32),                  # BN shift
            ],
            compiler_params=pltpu.CompilerParams(
                dimension_semantics=("arbitrary", "arbitrary"),
                vmem_limit_bytes=_VMEM_LIMIT_BYTES),
            cost_estimate=cost,
        )(x, w1, gamma, beta, w2, b2)
        return out[:, :out_dim]

    # ---------------- two-kernel fallback (h round-trips HBM) ----------------
    cost1 = pl.CostEstimate(
        flops=2 * n * din * hp + 4 * 8 * n_tiles * block_n * hp,
        transcendentals=0,
        bytes_accessed=(n * din * 4 + din * hp * csize + n * hp * csize
                        + n_tiles * 8 * 2 * hp * 4))
    h_mid, stats = pl.pallas_call(
        functools.partial(_fc1_stats_kernel, n_valid=n, block_n=block_n,
                          compute_dtype=compute_dtype),
        grid=(n_tiles,),
        in_specs=[
            pl.BlockSpec((block_n, din), lambda i: (i, 0)),
            pl.BlockSpec((din, hp), lambda i: (0, 0), pipeline_mode=pl.Buffered(1)),
        ],
        out_specs=[
            pl.BlockSpec((block_n, hp), lambda i: (i, 0)),
            pl.BlockSpec((1, 8, 2 * hp), lambda i: (i, 0, 0)),
        ],
        out_shape=[
            jax.ShapeDtypeStruct((n, hp), compute_dtype),
            jax.ShapeDtypeStruct((n_tiles, 8, 2 * hp), f32),
        ],
        compiler_params=pltpu.CompilerParams(
            dimension_semantics=("parallel",),     # per-tile partial stats
            vmem_limit_bytes=_VMEM_LIMIT_BYTES),
        cost_estimate=cost1,
    )(x, w1)

    # Tiny hp-sized glue: reduce the per-tile partials, fold BN into scale/shift.
    s = jnp.sum(stats[:, 0, :], axis=0)
    mean = (s[:hp] / n)[None, :]
    var = jnp.maximum((s[hp:] / n)[None, :] - mean * mean, 0.0)
    scale = gamma * lax.rsqrt(var + BN_EPS)
    shift = beta - mean * scale

    cost2 = pl.CostEstimate(
        flops=2 * n * hp * doutp + 4 * n * hp,
        transcendentals=0,
        bytes_accessed=(n * hp * csize + 2 * hp * 4 + hp * doutp * csize
                        + doutp * 4 + n * doutp * osize))
    out = pl.pallas_call(
        _bn_relu_fc2_kernel,
        grid=(n_tiles,),
        in_specs=[
            pl.BlockSpec((block_n, hp), lambda i: (i, 0)),
            pl.BlockSpec((1, hp), lambda i: (0, 0), pipeline_mode=pl.Buffered(1)),
            pl.BlockSpec((1, hp), lambda i: (0, 0), pipeline_mode=pl.Buffered(1)),
            pl.BlockSpec((hp, doutp), lambda i: (0, 0), pipeline_mode=pl.Buffered(1)),
            pl.BlockSpec((1, doutp), lambda i: (0, 0), pipeline_mode=pl.Buffered(1)),
        ],
        out_specs=pl.BlockSpec((block_n, doutp), lambda i: (i, 0)),
        out_shape=jax.ShapeDtypeStruct((n, doutp), out_dtype),
        compiler_params=pltpu.CompilerParams(
            dimension_semantics=("parallel",),
            vmem_limit_bytes=_VMEM_LIMIT_BYTES),
        cost_estimate=cost2,
    )(h_mid, scale, shift, w2, b2)
    return out[:, :out_dim]


# ---------------------------------------------------------------------------
# Params / reference
# ---------------------------------------------------------------------------
def init_params(key, input_dim, hidden_dim, output_dim):
    """Deterministic synthetic parameter init (PyTorch-Linear-like uniform).
    Linear weights stored pre-transposed as (in_features, out_features)."""
    k1, k2, k3, k4 = jax.random.split(key, 4)
    lim1 = 1.0 / (input_dim ** 0.5)
    lim2 = 1.0 / (hidden_dim ** 0.5)
    return {
        "w1": jax.random.uniform(k1, (input_dim, hidden_dim), jnp.float32, -lim1, lim1),
        "b1": jax.random.uniform(k2, (hidden_dim,), jnp.float32, -lim1, lim1),
        "gamma": jnp.ones((hidden_dim,), jnp.float32),
        "beta": jnp.zeros((hidden_dim,), jnp.float32),
        "w2": jax.random.uniform(k3, (hidden_dim, output_dim), jnp.float32, -lim2, lim2),
        "b2": jax.random.uniform(k4, (output_dim,), jnp.float32, -lim2, lim2),
    }


def reference_forward(x, params):
    """Pure-JAX reference of the PyTorch forward (training-mode BN)."""
    h = x @ params["w1"] + params["b1"]
    mean = jnp.mean(h, axis=0, keepdims=True)
    var = jnp.mean((h - mean) ** 2, axis=0, keepdims=True)
    a = jnp.maximum((h - mean) / jnp.sqrt(var + BN_EPS) * params["gamma"] + params["beta"], 0.0)
    return a @ params["w2"] + params["b2"]


if __name__ == "__main__":
    # Small shapes consistent with Predictor(input_dim, hidden_dim, output_dim).
    # Non-multiples of 8/128 exercise the padding / partial-tile masking paths;
    # the small block_n values below are only to exercise multi-tile grids at
    # these tiny shapes (perf configs should use block_n >= 512).
    batch, input_dim, hidden_dim, output_dim = 200, 160, 96, 144

    key = jax.random.PRNGKey(0)
    kx, kp = jax.random.split(key)
    x = jax.random.normal(kx, (batch, input_dim), jnp.float32)
    params = init_params(kp, input_dim, hidden_dim, output_dim)
    ref = reference_forward(x, params)

    # Fused path, f32 MXU operands (strict numerical check).
    prep_f32 = prepare_params(params, compute_dtype=jnp.float32)
    fwd_f32 = jax.jit(functools.partial(
        predictor_forward, out_dim=output_dim,
        compute_dtype=jnp.float32, block_n=128))
    out_f32 = jax.block_until_ready(fwd_f32(x, prep_f32))
    assert out_f32.shape == (batch, output_dim)
    assert jnp.allclose(out_f32, ref, atol=2e-3, rtol=2e-3), "fused f32 mismatch vs reference"

    # Fused path, bf16 MXU operands (the fast path) — looser tolerance.
    prep_bf16 = prepare_params(params, compute_dtype=jnp.bfloat16)
    fwd_bf16 = jax.jit(functools.partial(
        predictor_forward, out_dim=output_dim,
        compute_dtype=jnp.bfloat16, block_n=128))
    out_bf16 = jax.block_until_ready(fwd_bf16(x, prep_bf16))
    assert out_bf16.shape == (batch, output_dim)
    assert jnp.allclose(out_bf16, ref, atol=6e-2, rtol=6e-2), "fused bf16 mismatch vs reference"

    # Forced two-kernel fallback (large-batch branch, megacore-parallel stats).
    fwd_fb = jax.jit(functools.partial(
        predictor_forward, out_dim=output_dim,
        compute_dtype=jnp.bfloat16, block_n=64, fuse=False))
    out_fb = jax.block_until_ready(fwd_fb(x, prep_bf16))
    assert out_fb.shape == (batch, output_dim)
    assert jnp.allclose(out_fb, ref, atol=6e-2, rtol=6e-2), "fallback bf16 mismatch vs reference"

    print("KERNEL_OK")
</pallas_src>

<mosaic_0001>
module attributes {stable_mosaic.version = 11 : i64} {
  func.func @_fused_kernel(%arg0: i32, %arg1: i32, %arg2: memref<128x160xf32, #tpu.memory_space<vmem>>, %arg3: memref<160x128xf32, #tpu.memory_space<vmem>>, %arg4: memref<1x128xf32, #tpu.memory_space<vmem>>, %arg5: memref<1x128xf32, #tpu.memory_space<vmem>>, %arg6: memref<128x256xf32, #tpu.memory_space<vmem>>, %arg7: memref<1x256xf32, #tpu.memory_space<vmem>>, %arg8: memref<128x256xf32, #tpu.memory_space<vmem>>, %arg9: memref<2x128x128xf32, #tpu.memory_space<vmem>>, %arg10: memref<8x128xf32, #tpu.memory_space<vmem>>, %arg11: memref<8x128xf32, #tpu.memory_space<vmem>>, %arg12: memref<1x128xf32, #tpu.memory_space<vmem>>, %arg13: memref<1x128xf32, #tpu.memory_space<vmem>>) attributes {dimension_semantics = [#tpu.dimension_semantics<arbitrary>, #tpu.dimension_semantics<arbitrary>], iteration_bounds = array<i64: 2, 2>, scalar_prefetch = 0 : i64, scratch_operands = 5 : i64, tpu.core_type = #tpu.core_type<tc>, window_params = [{transform_indices = @transform_0, window_bounds = array<i64: 128, 160>}, {pipeline_mode = #tpu.pipeline_mode<synchronous>, transform_indices = @transform_1, window_bounds = array<i64: 160, 128>}, {pipeline_mode = #tpu.pipeline_mode<synchronous>, transform_indices = @transform_2, window_bounds = array<i64: 1, 128>}, {pipeline_mode = #tpu.pipeline_mode<synchronous>, transform_indices = @transform_3, window_bounds = array<i64: 1, 128>}, {pipeline_mode = #tpu.pipeline_mode<synchronous>, transform_indices = @transform_4, window_bounds = array<i64: 128, 256>}, {pipeline_mode = #tpu.pipeline_mode<synchronous>, transform_indices = @transform_5, window_bounds = array<i64: 1, 256>}, {transform_indices = @transform_6, window_bounds = array<i64: 128, 256>}]} {
    %c0_i32 = arith.constant 0 : i32
    %0 = arith.cmpi eq, %arg0, %c0_i32 : i32
    %1 = arith.extui %0 : i1 to i32
    %c0_i32_0 = arith.constant 0 : i32
    %2 = arith.cmpi ne, %1, %c0_i32_0 : i32
    scf.if %2 {
      %c0_i32_2 = arith.constant 0 : i32
      %6 = arith.cmpi eq, %arg1, %c0_i32_2 : i32
      %7 = arith.extui %6 : i1 to i32
      %c0_i32_3 = arith.constant 0 : i32
      %8 = arith.cmpi ne, %7, %c0_i32_3 : i32
      scf.if %8 {
        %cst_23 = arith.constant 0.000000e+00 : f32
        %39 = vector.broadcast %cst_23 : f32 to vector<8x128xf32>
        %c0_24 = arith.constant 0 : index
        %c0_25 = arith.constant 0 : index
        %40 = vector.load %arg10[%c0_24, %c0_25] : memref<8x128xf32, #tpu.memory_space<vmem>>, vector<8x128xf32>
        tpu.vector_store %arg10[%c0_24, %c0_25], %39 {strides = array<i32>} : memref<8x128xf32, #tpu.memory_space<vmem>>, vector<8x128xf32>,
        %cst_26 = arith.constant 0.000000e+00 : f32
        %41 = vector.broadcast %cst_26 : f32 to vector<8x128xf32>
        %c0_27 = arith.constant 0 : index
        %c0_28 = arith.constant 0 : index
        %42 = vector.load %arg11[%c0_27, %c0_28] : memref<8x128xf32, #tpu.memory_space<vmem>>, vector<8x128xf32>
        tpu.vector_store %arg11[%c0_27, %c0_28], %41 {strides = array<i32>} : memref<8x128xf32, #tpu.memory_space<vmem>>, vector<8x128xf32>,
      } else {
      }
      %c0 = arith.constant 0 : index
      %c0_4 = arith.constant 0 : index
      %9 = vector.load %arg2[%c0, %c0_4] : memref<128x160xf32, #tpu.memory_space<vmem>>, vector<128x160xf32>
      %c0_5 = arith.constant 0 : index
      %c0_6 = arith.constant 0 : index
      %10 = vector.load %arg3[%c0_5, %c0_6] : memref<160x128xf32, #tpu.memory_space<vmem>>, vector<160x128xf32>
      %cst = arith.constant dense<0.000000e+00> : vector<128x128xf32>
      %11 = tpu.matmul %9, %10, %cst {dimension_numbers = #tpu.dot_dimension_numbers<[1], [0], [0], [1], [0, 0, 1, 1], [], []>} : vector<128x160xf32>, vector<160x128xf32>, vector<128x128xf32> -> vector<128x128xf32>
      %c128_i32 = arith.constant 128 : i32
      %12 = arith.muli %arg1, %c128_i32 : i32
      %13 = tpu.iota {dimensions = array<i32: 0>} : vector<128x1xi32>
      %14 = vector.broadcast %12 : i32 to vector<128x1xi32>
      %15 = arith.addi %14, %13 : vector<128x1xi32>
      %c200_i32 = arith.constant 200 : i32
      %16 = vector.broadcast %c200_i32 : i32 to vector<128x1xi32>
      %17 = arith.cmpi slt, %15, %16 : vector<128x1xi32>
      %cst_7 = arith.constant 0.000000e+00 : f32
      %18 = vector.shape_cast %17 : vector<128x1xi1> to vector<128x1xi1>
      %19 = vector.broadcast %18 : vector<128x1xi1> to vector<128x128xi1>
      %20 = vector.broadcast %cst_7 : f32 to vector<128x128xf32>
      %21 = arith.select %19, %11, %20 : vector<128x128xi1>, vector<128x128xf32>
      %cst_8 = arith.constant 1.000000e+00 : f32
      %22 = vector.broadcast %cst_8 : f32 to vector<8x128xf32>
      %c0_9 = arith.constant 0 : index
      %c0_10 = arith.constant 0 : index
      %23 = vector.load %arg10[%c0_9, %c0_10] : memref<8x128xf32, #tpu.memory_space<vmem>>, vector<8x128xf32>
      %cst_11 = arith.constant dense<0.000000e+00> : vector<8x128xf32>
      %24 = tpu.matmul %22, %21, %cst_11 {dimension_numbers = #tpu.dot_dimension_numbers<[1], [0], [0], [1], [0, 0, 1, 1], [], []>} : vector<8x128xf32>, vector<128x128xf32>, vector<8x128xf32> -> vector<8x128xf32>
      %25 = arith.addf %23, %24 : vector<8x128xf32>
      %c0_12 = arith.constant 0 : index
      %c0_13 = arith.constant 0 : index
      %26 = vector.load %arg10[%c0_12, %c0_13] : memref<8x128xf32, #tpu.memory_space<vmem>>, vector<8x128xf32>
      tpu.vector_store %arg10[%c0_12, %c0_13], %25 {strides = array<i32>} : memref<8x128xf32, #tpu.memory_space<vmem>>, vector<8x128xf32>,
      %c0_14 = arith.constant 0 : index
      %c0_15 = arith.constant 0 : index
      %27 = vector.load %arg11[%c0_14, %c0_15] : memref<8x128xf32, #tpu.memory_space<vmem>>, vector<8x128xf32>
      %28 = arith.mulf %21, %21 : vector<128x128xf32>
      %cst_16 = arith.constant dense<0.000000e+00> : vector<8x128xf32>
      %29 = tpu.matmul %22, %28, %cst_16 {dimension_numbers = #tpu.dot_dimension_numbers<[1], [0], [0], [1], [0, 0, 1, 1], [], []>} : vector<8x128xf32>, vector<128x128xf32>, vector<8x128xf32> -> vector<8x128xf32>
      %30 = arith.addf %27, %29 : vector<8x128xf32>
      %c0_17 = arith.constant 0 : index
      %c0_18 = arith.constant 0 : index
      %31 = vector.load %arg11[%c0_17, %c0_18] : memref<8x128xf32, #tpu.memory_space<vmem>>, vector<8x128xf32>
      tpu.vector_store %arg11[%c0_17, %c0_18], %30 {strides = array<i32>} : memref<8x128xf32, #tpu.memory_space<vmem>>, vector<8x128xf32>,
      %32 = arith.index_cast %arg1 : i32 to index
      %c0_19 = arith.constant 0 : index
      %c0_20 = arith.constant 0 : index
      %33 = vector.load %arg9[%32, %c0_19, %c0_20] : memref<2x128x128xf32, #tpu.memory_space<vmem>>, vector<1x128x128xf32>
      %34 = vector.shape_cast %33 : vector<1x128x128xf32> to vector<128x128xf32>
      %35 = vector.shape_cast %21 : vector<128x128xf32> to vector<1x128x128xf32>
      tpu.vector_store %arg9[%32, %c0_19, %c0_20], %35 {strides = array<i32>} : memref<2x128x128xf32, #tpu.memory_space<vmem>>, vector<1x128x128xf32>,
      %c1_i32_21 = arith.constant 1 : i32
      %36 = arith.cmpi eq, %arg1, %c1_i32_21 : i32
      %37 = arith.extui %36 : i1 to i32
      %c0_i32_22 = arith.constant 0 : i32
      %38 = arith.cmpi ne, %37, %c0_i32_22 : i32
      scf.if %38 {
        %c0_23 = arith.constant 0 : index
        %c0_24 = arith.constant 0 : index
        %39 = vector.load %arg10[%c0_23, %c0_24] : memref<8x128xf32, #tpu.memory_space<vmem>>, vector<1x128xf32>
        %cst_25 = arith.constant 5.000000e-03 : f32
        %40 = vector.broadcast %cst_25 : f32 to vector<1x128xf32>
        %41 = arith.mulf %39, %40 : vector<1x128xf32>
        %c0_26 = arith.constant 0 : index
        %c0_27 = arith.constant 0 : index
        %42 = vector.load %arg11[%c0_26, %c0_27] : memref<8x128xf32, #tpu.memory_space<vmem>>, vector<1x128xf32>
        %cst_28 = arith.constant 5.000000e-03 : f32
        %43 = vector.broadcast %cst_28 : f32 to vector<1x128xf32>
        %44 = arith.mulf %42, %43 : vector<1x128xf32>
        %45 = arith.mulf %41, %41 : vector<1x128xf32>
        %46 = arith.subf %44, %45 : vector<1x128xf32>
        %cst_29 = arith.constant 0.000000e+00 : f32
        %47 = vector.broadcast %cst_29 : f32 to vector<1x128xf32>
        %48 = arith.maximumf %46, %47 : vector<1x128xf32>
        %c0_30 = arith.constant 0 : index
        %c0_31 = arith.constant 0 : index
        %49 = vector.load %arg4[%c0_30, %c0_31] : memref<1x128xf32, #tpu.memory_space<vmem>>, vector<1x128xf32>
        %cst_32 = arith.constant 9.99999974E-6 : f32
        %50 = vector.broadcast %cst_32 : f32 to vector<1x128xf32>
        %51 = arith.addf %48, %50 : vector<1x128xf32>
        %52 = math.rsqrt %51 : vector<1x128xf32>
        %53 = arith.mulf %49, %52 : vector<1x128xf32>
        %c0_33 = arith.constant 0 : index
        %c0_34 = arith.constant 0 : index
        %54 = vector.load %arg12[%c0_33, %c0_34] : memref<1x128xf32, #tpu.memory_space<vmem>>, vector<1x128xf32>
        tpu.vector_store %arg12[%c0_33, %c0_34], %53 {strides = array<i32>} : memref<1x128xf32, #tpu.memory_space<vmem>>, vector<1x128xf32>,
        %c0_35 = arith.constant 0 : index
        %c0_36 = arith.constant 0 : index
        %55 = vector.load %arg5[%c0_35, %c0_36] : memref<1x128xf32, #tpu.memory_space<vmem>>, vector<1x128xf32>
        %56 = arith.mulf %41, %53 : vector<1x128xf32>
        %57 = arith.subf %55, %56 : vector<1x128xf32>
        %c0_37 = arith.constant 0 : index
        %c0_38 = arith.constant 0 : index
        %58 = vector.load %arg13[%c0_37, %c0_38] : memref<1x128xf32, #tpu.memory_space<vmem>>, vector<1x128xf32>
        tpu.vector_store %arg13[%c0_37, %c0_38], %57 {strides = array<i32>} : memref<1x128xf32, #tpu.memory_space<vmem>>, vector<1x128xf32>,
      } else {
      }
    } else {
    }
    %c1_i32 = arith.constant 1 : i32
    %3 = arith.cmpi eq, %arg0, %c1_i32 : i32
    %4 = arith.extui %3 : i1 to i32
    %c0_i32_1 = arith.constant 0 : i32
    %5 = arith.cmpi ne, %4, %c0_i32_1 : i32
    scf.if %5 {
      %6 = arith.index_cast %arg1 : i32 to index
      %c0 = arith.constant 0 : index
      %c0_2 = arith.constant 0 : index
      %7 = vector.load %arg9[%6, %c0, %c0_2] : memref<2x128x128xf32, #tpu.memory_space<vmem>>, vector<1x128x128xf32>
      %8 = vector.shape_cast %7 : vector<1x128x128xf32> to vector<128x128xf32>
      %c0_3 = arith.constant 0 : index
      %c0_4 = arith.constant 0 : index
      %9 = vector.load %arg12[%c0_3, %c0_4] : memref<1x128xf32, #tpu.memory_space<vmem>>, vector<1x128xf32>
      %10 = vector.broadcast %9 : vector<1x128xf32> to vector<128x128xf32>
      %11 = arith.mulf %8, %10 : vector<128x128xf32>
      %c0_5 = arith.constant 0 : index
      %c0_6 = arith.constant 0 : index
      %12 = vector.load %arg13[%c0_5, %c0_6] : memref<1x128xf32, #tpu.memory_space<vmem>>, vector<1x128xf32>
      %13 = vector.broadcast %12 : vector<1x128xf32> to vector<128x128xf32>
      %14 = arith.addf %11, %13 : vector<128x128xf32>
      %cst = arith.constant 0.000000e+00 : f32
      %15 = vector.broadcast %cst : f32 to vector<128x128xf32>
      %16 = arith.maximumf %14, %15 : vector<128x128xf32>
      %c0_7 = arith.constant 0 : index
      %c0_8 = arith.constant 0 : index
      %17 = vector.load %arg6[%c0_7, %c0_8] : memref<128x256xf32, #tpu.memory_space<vmem>>, vector<128x256xf32>
      %cst_9 = arith.constant dense<0.000000e+00> : vector<128x256xf32>
      %18 = tpu.matmul %16, %17, %cst_9 {dimension_numbers = #tpu.dot_dimension_numbers<[1], [0], [0], [1], [0, 0, 1, 1], [], []>} : vector<128x128xf32>, vector<128x256xf32>, vector<128x256xf32> -> vector<128x256xf32>
      %c0_10 = arith.constant 0 : index
      %c0_11 = arith.constant 0 : index
      %19 = vector.load %arg7[%c0_10, %c0_11] : memref<1x256xf32, #tpu.memory_space<vmem>>, vector<1x256xf32>
      %20 = vector.broadcast %19 : vector<1x256xf32> to vector<128x256xf32>
      %21 = arith.addf %18, %20 : vector<128x256xf32>
      %c0_12 = arith.constant 0 : index
      %c0_13 = arith.constant 0 : index
      %22 = vector.load %arg8[%c0_12, %c0_13] : memref<128x256xf32, #tpu.memory_space<vmem>>, vector<128x256xf32>
      tpu.vector_store %arg8[%c0_12, %c0_13], %21 {strides = array<i32>} : memref<128x256xf32, #tpu.memory_space<vmem>>, vector<128x256xf32>,
    } else {
    }
    return
  }
  func.func @transform_0(%arg0: i32, %arg1: i32) -> (i32, i32) {
    %c1_i32 = arith.constant 1 : i32
    %0 = arith.subi %c1_i32, %arg0 : i32
    %1 = arith.muli %arg1, %0 : i32
    %c1_i32_0 = arith.constant 1 : i32
    %2 = arith.muli %c1_i32_0, %arg0 : i32
    %3 = arith.addi %1, %2 : i32
    %c0_i32 = arith.constant 0 : i32
    %c0_i32_1 = arith.constant 0 : i32
    return %3, %c0_i32 : i32, i32
  }
  func.func @transform_1(%arg0: i32, %arg1: i32) -> (i32, i32) {
    %c0_i32 = arith.constant 0 : i32
    %c0_i32_0 = arith.constant 0 : i32
    %c0_i32_1 = arith.constant 0 : i32
    return %c0_i32, %c0_i32_0 : i32, i32
  }
  func.func @transform_2(%arg0: i32, %arg1: i32) -> (i32, i32) {
    %c0_i32 = arith.constant 0 : i32
    %c0_i32_0 = arith.constant 0 : i32
    %c0_i32_1 = arith.constant 0 : i32
    return %c0_i32, %c0_i32_0 : i32, i32
  }
  func.func @transform_3(%arg0: i32, %arg1: i32) -> (i32, i32) {
    %c0_i32 = arith.constant 0 : i32
    %c0_i32_0 = arith.constant 0 : i32
    %c0_i32_1 = arith.constant 0 : i32
    return %c0_i32, %c0_i32_0 : i32, i32
  }
  func.func @transform_4(%arg0: i32, %arg1: i32) -> (i32, i32) {
    %c0_i32 = arith.constant 0 : i32
    %c0_i32_0 = arith.constant 0 : i32
    %c0_i32_1 = arith.constant 0 : i32
    return %c0_i32, %c0_i32_0 : i32, i32
  }
  func.func @transform_5(%arg0: i32, %arg1: i32) -> (i32, i32) {
    %c0_i32 = arith.constant 0 : i32
    %c0_i32_0 = arith.constant 0 : i32
    %c0_i32_1 = arith.constant 0 : i32
    return %c0_i32, %c0_i32_0 : i32, i32
  }
  func.func @transform_6(%arg0: i32, %arg1: i32) -> (i32, i32) {
    %0 = arith.muli %arg1, %arg0 : i32
    %c0_i32 = arith.constant 0 : i32
    %c0_i32_0 = arith.constant 0 : i32
    return %0, %c0_i32 : i32, i32
  }
}

</mosaic_0001>

<bundles_post_ra>
// kernel: predictor_forward.1
= control target key start
LH: loop header
LB: loop body
LE: loop exit
PB: predicated region body
PF: predicated region fallthrough
CT: control target
= control target key end

     0   :  { %s2985_s0 = inlined_call_operand.hbm [shape: f32[200,160], index: 0, kind: input, shape index: {}]   ;;  %s2986_s1 = inlined_call_operand.hbm [shape: f32[160,128], index: 1, kind: input, shape index: {}]   ;;  %s2987_s2 = inlined_call_operand.hbm [shape: f32[1,128], index: 2, kind: input, shape index: {}]   ;;  %s2988_s3 = inlined_call_operand.hbm [shape: f32[1,128], index: 3, kind: input, shape index: {}]   ;;  %s2989_s4 = inlined_call_operand.hbm [shape: f32[128,256], index: 4, kind: input, shape index: {}]   ;;  %s2990_s5 = inlined_call_operand.hbm [shape: f32[1,256], index: 5, kind: input, shape index: {}]   ;;  %s2991_s6 = inlined_call_operand.hbm [shape: f32[200,256], index: 6, kind: output, shape index: {}]  }
   0x1   :  { %3007 = sst [smem:[#allocation36_spill]] %s2991_s6 }
   0x2   :  { %11 = vsyncpa [#allocation8], 0 }
   0x3   :  { %13 = vsyncpa [#allocation8 + $0x1], 0 }
   0x4   :  { %14 = vsyncpa [#allocation11], 0 }
   0x5   :  { %15 = vsyncpa [#allocation14], 0 }
   0x6   :  { %16 = vsyncpa [#allocation17], 0 }
   0x7   :  { %17 = vsyncpa [#allocation9], 0 }
   0x8   :  { %19 = vsyncpa [#allocation9 + $0x1], 0  ;;  %s2262_s21 = smov 0   ;;  %s2264_s22 = smov 0  }
   0x9   :  { %s2266_s23 = smov 0   ;;  %s2268_s24 = smov 0  }
   0xa   :  { %s2270_s25 = smov 0   ;;  %s2272_s26 = smov 0  }
   0xb   :  { %s2274_s27 = smov 0   ;;  %s2276_s28 = smov 0  }
   0xc   :  { %s2278_s29 = smov 0   ;;  %s2280_s30 = smov 0  }
   0xd   :  { %s2282_s7 = smov 0  }
   0xe LB: > { %3008 = sst [smem:[#allocation24_spill]] %s2164_s21  ;;  %s1419_s8 = sadd.s32 4294967295, %s2204_s7   ;;  %s2204_s7 = sphi %s2282_s7, %s25_s7   ;;  %s2200_s30 = sphi %s2280_s30, %s3052_s30   ;;  %s2196_s29 = sphi %s2278_s29, %s3051_s29   ;;  %s2192_s28 = sphi %s2276_s28, %s3050_s28   ;;  %s2188_s27 = sphi %s2274_s27, %s3049_s27   ;;  %s2184_s26 = sphi %s2272_s26, %s3057_s26   ;;  %s2180_s25 = sphi %s2270_s25, %s3056_s25   ;;  %s2176_s24 = sphi %s2268_s24, %s3055_s24   ;;  %s2172_s23 = sphi %s2266_s23, %s3047_s23   ;;  %s2168_s22 = sphi %s2264_s22, %s3054_s22   ;;  %s2164_s21 = sphi %s2262_s21, %s3053_s21  }
   0xf   : > { %3009 = sst [smem:[#allocation25_spill]] %s2172_s23  ;;  %s34_s10 = sadd.s32 1, %s2196_s29 }
  0x10   : > { %3010 = sst [smem:[#allocation26_spill]] %s2188_s27  ;;  %s37_s11 = sadd.s32 1, %s2200_s30 }
  0x11   : > { %3011 = sst [smem:[#allocation27_spill]] %s2192_s28  ;;  %p35_p0 = scmp.ge.s32.totalorder %s34_s10, 2 }
  0x12   : > { %3012 = sst [smem:[#allocation28_spill]] %s2196_s29  ;;  %s41_s12 = ssub.s32 1, %s2200_s30 }
  0x13   : > { %3013 = sst [smem:[#allocation29_spill]] %s2200_s30  ;;  %s42_s13 = smul.u32 %s2196_s29, %s41_s12 }
  0x14   : > { %s50_s14 = sadd.s32 1, %s2184_s26  ;;  %s3059_s10 = smov (%p35_p0, %s34_s10), 0 }
  0x15   : > { %3014 = sst [smem:[#allocation30_spill]] %s3059_s10  ;;  %s3061_s11 = smov (!%p35_p0, %s37_s11), %s2200_s30 }
  0x16   : > { %s2326_s15 = sadd.s32 %s2200_s30, %s42_s13  ;;  %p57_p1 = scmp.ne.s32.totalorder %s2184_s26, %s2180_s25 }
  0x17   : > { %p39_p2 = scmp.ge.s32.totalorder %s3061_s11, 2  ;;  %p58_p3 = scmp.eq.s32.totalorder %s2204_s7, 0 }
  0x18   : > { %p63_p4 = scmp.ne.s32.totalorder %s2180_s25, %s2176_s24  ;;  %p2332_p5 = scmp.eq.s32.totalorder %s1419_s8, 0 }
  0x19   : > { %s3063_s11 = smov (%p39_p2, %s3061_s11), 0  ;;  %p2338_p6 = por %p58_p3, %p57_p1 }
  0x1a   : > { %s3015_s16 = scalar_select %p2332_p5, 1, 0 }
  0x1b   : > { %3016 = sst [smem:[#allocation31_spill]] %s3063_s11  ;;  %p2344_p7 = por %p2332_p5, %p63_p4 }
  0x1c   : > { %s3017_s17 = scalar_select %p2338_p6, 1, 0 }
  0x1d   : > { %s3018_s18 = scalar_select %p2344_p7, 1, 0 }
  0x1e   : > { %s44_s19 = ssub.s32 1, %s3063_s11  ;;  %s178_s20 = smul.u32 %s2196_s29, %s2200_s30 }
  0x1f   : > { %3019 = sst [smem:[#allocation32_spill]] %s3018_s18  ;;  %s45_s24 = smul.u32 %s44_s19, %s3059_s10 }
  0x20   : > { %s183_s12 = sadd.s32 1, %s2172_s23  ;;  %s179_s13 = smul.u32 %s3063_s11, %s3059_s10 }
  0x21   : > { %p193_p8 = scmp.ne.s32.totalorder %s2172_s23, %s2168_s22  ;;  %s46_s9 = sadd.s32 %s45_s24, %s3063_s11 }
  0x22   : > { %p194_p9 = scmp.eq.s32.totalorder %s1419_s8, 3  ;;  %s47_s6 = ssub.s32 %s2326_s15, %s46_s9 }
  0x23   : > { %s180_s27 = ssub.s32 %s178_s20, %s179_s13  ;;  %p48_p10 = scmp.eq.s32.totalorder %s47_s6, 0 }
  0x24   : > { %p181_p11 = scmp.eq.s32.totalorder %s180_s27, 0  ;;  %p2359_p12 = por %p194_p9, %p193_p8 }
  0x25   : > { %p199_p13 = scmp.ne.s32.totalorder %s2168_s22, %s2164_s21  ;;  %s3023_s19 = sadd.s32 4294967294, %s2204_s7  }
  0x26   : > { %s3020_s28 = scalar_select %p2359_p12, 1, 0 }
  0x27   : > { %s2366_s18 = scalar_select %p48_p10, %s2184_s26, %s50_s14  }
  0x28   : > { %s2369_s30 = scalar_select %p181_p11, %s2172_s23, %s183_s12  }
  0x29   : > { %3021 = sst [smem:[#allocation33_spill]] %s2366_s18  ;;  %p200_p0 = scmp.eq.s32.totalorder %s3023_s19, 3 }
  0x2a   : > { %3022 = sst [smem:[#allocation34_spill]] %s2369_s30  ;;  %p1421_p1 = scmp.ge.s32.totalorder %s2204_s7, 1 }
  0x2b   : > { %p207_p2 = scmp.lt.s32.totalorder %s2204_s7, 5  ;;  %p2375_p3 = por %p200_p0, %p199_p13 }
  0x2c   : > { %s2206_s27 = smov [#allocation10]   ;;  %s2207_s20 = smov [#allocation13]  }
  0x2d   : > { %s3024_s8 = scalar_select %p2375_p3, 1, 0 }
  0x2e   : > { %p2379_p4 = pnand %p1421_p1, %p207_p2  ;;  %s219_s9 = sshll.u32 %s2206_s27, 4  ;;  %s2383_s9 = int_to_ptr.vmem [resolvable:$true] %s219_s9 }
  0x2f   : > { %3025 = sst [smem:[#allocation35_spill]] %s3024_s8  ;;  %s244_s24 = sshll.u32 %s2207_s20, 4  ;;  %s2393_s24 = int_to_ptr.vmem [resolvable:$true] %s244_s24 }
  0x30   : > { %s3026_s6 = scalar_select %p2379_p4, 1, 0 }
  0x31   : > { %p1762_p8 = pneg %p2379_p4  ;;  %s2208_s12 = smov [#allocation12]  }
  0x32   : > { %s233_s13 = sshll.u32 %s2208_s12, 4  ;;  %s1902_s11 = scalar_lea.hbm %s2986_s1, 2560  ;;  %s2395_s13 = int_to_ptr.vmem [resolvable:$true] %s233_s13 }
  0x33   : > { %p2389_p9 = pnand %p1762_p8, %p2332_p5  ;;  %p1903_p10 = scmp.ne.s32.totalorder %s2986_s1, %s1902_s11 }
  0x34   : > { %p1909_p1 = scmp.lt.u32.totalorder %s1902_s11, %s2986_s1 }
  0x35   : > { %p2405_p11 = pneg %p2389_p9 }
  0x37   : > { %p1905_p13 = pnand %p2405_p11, %p1903_p10 }
  0x39   : > { %p1906_p0 = pneg %p1905_p13 }
  0x3b   : > { %p1911_p2 = pnand %p1909_p1, %p1906_p0 }
  0x3d   : > { %1914 = shalt.err (!%p1911_p2)
}
  0x3e   : > { %s1915_s29 = scalar_lea.vmem %s2383_s9, 2560  ;;  %p1923_p5 = scmp.lt.s32.totalorder %s2383_s9, %s2383_s9 }
  0x3f   : > { %p1916_p8 = scmp.ne.s32.totalorder %s2383_s9, %s1915_s29  ;;  %p1924_p7 = scmp.lt.s32.totalorder %s1915_s29, %s1915_s29 }
  0x41   : > { %p1918_p3 = pnand %p1916_p8, %p2405_p11  ;;  %p1925_p10 = por %p1924_p7, %p1923_p5 }
  0x43   : > { %p1919_p12 = pneg %p1918_p3 }
  0x45   : > { %p1926_p13 = pnand %p1925_p10, %p1919_p12 }
  0x47   : > { %1929 = shalt.err (!%p1926_p13)
}
  0x48   : > { %s2209_s10 = smov 128   ;;  %s2210_s11 = smov 8  }
  0x49   : > { %1765 = dma.hbm_to_vmem [thread:$0]  (!%p2389_p9), %s2986_s1, 2560, %s2383_s9, [#allocation11], %s2209_s10, %s2209_s10, %s2210_s11  }
  0x4a   : > { %s1930_s30 = scalar_lea.hbm %s2988_s3, 16 }
  0x4b   : > { %p1931_p5 = scmp.ne.s32.totalorder %s2988_s3, %s1930_s30  ;;  %p1937_p3 = scmp.lt.u32.totalorder %s1930_s30, %s2988_s3 }
  0x4d   : > { %p1933_p7 = pnand %p1931_p5, %p2405_p11 }
  0x4f   : > { %p1934_p12 = pneg %p1933_p7 }
  0x51   : > { %p1939_p0 = pnand %p1937_p3, %p1934_p12 }
  0x53   : > { %1942 = shalt.err (!%p1939_p0)
}
  0x54   : > { %s1943_s9 = scalar_lea.vmem %s2393_s24, 16  ;;  %s1950_s23 = scalar_lea.vmem %s2393_s24, 32 }
  0x55   : > { %p1944_p1 = scmp.ne.s32.totalorder %s2393_s24, %s1943_s9  ;;  %p1951_p10 = scmp.lt.s32.totalorder %s2393_s24, %s2393_s24 }
  0x56   : > { %p1952_p13 = scmp.lt.s32.totalorder %s1950_s23, %s1943_s9 }
  0x57   : > { %p1946_p2 = pnand %p1944_p1, %p2405_p11 }
  0x58   : > { %p1953_p5 = por %p1952_p13, %p1951_p10 }
  0x59   : > { %p1947_p8 = pneg %p1946_p2 }
  0x5b   : > { %p1954_p7 = pnand %p1953_p5, %p1947_p8 }
  0x5d   : > { %1957 = shalt.err (!%p1954_p7)
}
  0x5e   : > { %1771 = dma.hbm_to_vmem [thread:$0]  (!%p2389_p9), %s2988_s3, 16, %s2393_s24, [#allocation14]  }
  0x5f   : > { %s1958_s11 = scalar_lea.hbm %s2987_s2, 16 }
  0x60   : > { %p1959_p12 = scmp.ne.s32.totalorder %s2987_s2, %s1958_s11  ;;  %p1965_p1 = scmp.lt.u32.totalorder %s1958_s11, %s2987_s2 }
  0x62   : > { %p1961_p3 = pnand %p1959_p12, %p2405_p11 }
  0x64   : > { %p1962_p0 = pneg %p1961_p3 }
  0x66   : > { %p1967_p2 = pnand %p1965_p1, %p1962_p0 }
  0x68   : > { %1970 = shalt.err (!%p1967_p2)
}
  0x69   : > { %s1971_s24 = scalar_lea.vmem %s2395_s13, 16  ;;  %s1978_s29 = scalar_lea.vmem %s2395_s13, 32 }
  0x6a   : > { %p1972_p8 = scmp.ne.s32.totalorder %s2395_s13, %s1971_s24  ;;  %p1979_p5 = scmp.lt.s32.totalorder %s2395_s13, %s2395_s13 }
  0x6b   : > { %p1980_p7 = scmp.lt.s32.totalorder %s1978_s29, %s1971_s24 }
  0x6c   : > { %p1974_p10 = pnand %p1972_p8, %p2405_p11 }
  0x6d   : > { %p1981_p12 = por %p1980_p7, %p1979_p5 }
  0x6e   : > { %p1975_p13 = pneg %p1974_p10 }
  0x70   : > { %p1982_p3 = pnand %p1981_p12, %p1975_p13 }
  0x72   : > { %1985 = shalt.err (!%p1982_p3)
}
  0x73   : > { %1768 = dma.hbm_to_vmem [thread:$0]  (!%p2389_p9), %s2987_s2, 16, %s2395_s13, [#allocation11]  }
  0x74   : > { %s2211_s21 = smov [#allocation15]   ;;  %s1986_s11 = scalar_lea.hbm %s2989_s4, 4096 }
  0x75   : > { %s254_s30 = sshll.u32 %s2211_s21, 4  ;;  %p1987_p0 = scmp.ne.s32.totalorder %s2989_s4, %s1986_s11  ;;  %s255_s30 = int_to_ptr.vmem [resolvable:$true] %s254_s30 }
  0x76   : > { %p1993_p8 = scmp.lt.u32.totalorder %s1986_s11, %s2989_s4 }
  0x77   : > { %p1989_p1 = pnand %p1987_p0, %p2405_p11 }
  0x79   : > { %p1990_p2 = pneg %p1989_p1 }
  0x7b   : > { %p1995_p10 = pnand %p1993_p8, %p1990_p2 }
  0x7d   : > { %1998 = shalt.err (!%p1995_p10)
}
  0x7e   : > { %s1999_s13 = scalar_lea.vmem %s255_s30, 4096  ;;  %p2007_p12 = scmp.lt.s32.totalorder %s255_s30, %s255_s30 }
  0x7f   : > { %p2000_p13 = scmp.ne.s32.totalorder %s255_s30, %s1999_s13  ;;  %p2008_p3 = scmp.lt.s32.totalorder %s1999_s13, %s1999_s13 }
  0x81   : > { %p2002_p5 = pnand %p2000_p13, %p2405_p11  ;;  %p2009_p4 = por %p2008_p3, %p2007_p12 }
  0x83   : > { %p2003_p7 = pneg %p2002_p5 }
  0x85   : > { %p2010_p6 = pnand %p2009_p4, %p2003_p7 }
  0x87   : > { %2013 = shalt.err (!%p2010_p6)
}
  0x88   : > { %s2212_s24 = smov 256   ;;  %s2213_s29 = smov 16  }
  0x89   : > { %1774 = dma.hbm_to_vmem [thread:$0]  (!%p2389_p9), %s2989_s4, 4096, %s255_s30, [#allocation14], %s2212_s24, %s2212_s24, %s2213_s29  }
  0x8a   : > { %s2214_s21 = smov [#allocation16]   ;;  %s2014_s19 = scalar_lea.hbm %s2990_s5, 32 }
  0x8b   : > { %s268_s8 = sshll.u32 %s2214_s21, 4  ;;  %p2015_p6 = scmp.ne.s32.totalorder %s2990_s5, %s2014_s19  ;;  %s269_s8 = int_to_ptr.vmem [resolvable:$true] %s268_s8 }
  0x8c   : > { %p2021_p1 = scmp.lt.u32.totalorder %s2014_s19, %s2990_s5 }
  0x8d   : > { %p2017_p4 = pnand %p2015_p6, %p2405_p11 }
  0x8f   : > { %p2018_p0 = pneg %p2017_p4 }
  0x91   : > { %p2023_p2 = pnand %p2021_p1, %p2018_p0 }
  0x93   : > { %2026 = shalt.err (!%p2023_p2)
}
  0x94   : > { %s2027_s30 = scalar_lea.vmem %s269_s8, 32  ;;  %p2035_p5 = scmp.lt.s32.totalorder %s269_s8, %s269_s8 }
  0x95   : > { %p2028_p8 = scmp.ne.s32.totalorder %s269_s8, %s2027_s30  ;;  %p2036_p7 = scmp.lt.s32.totalorder %s2027_s30, %s2027_s30 }
  0x97   : > { %p2030_p10 = pnand %p2028_p8, %p2405_p11  ;;  %p2037_p12 = por %p2036_p7, %p2035_p5 }
  0x99   : > { %p2031_p13 = pneg %p2030_p10 }
  0x9b   : > { %p2038_p3 = pnand %p2037_p12, %p2031_p13 }
  0x9d   : > { %2041 = shalt.err (!%p2038_p3)
}
  0x9e   : > { %1777 = dma.hbm_to_vmem [thread:$0]  (!%p2389_p9), %s2990_s5, 32, %s269_s8, [#allocation17]  }
  0x9f   : > { %p1427_p6 = scmp.ge.s32.totalorder %s2204_s7, 4 }
  0xa0   : > { %p3029_p4 = scmp.ne.s32.totalorder (!%p1427_p6), %s3017_s17, 0 }
  0xa1   : > { %275 = sbr.rel (%p1427_p6) target bundleno = 203 (0xcb), region = 36 }
  0xa8   : > { %278 = sbr.rel (!%p3029_p4) target bundleno = 203 (0xcb), region = 40  ;;  %s279_s18 = sand.u32 (%p3029_p4), 1, %s2184_s26  }
  0xa9   : > { %s1429_s9 = sshll.u32 (%p3029_p4), %s2326_s15, 4  ;;  %s1428_s23 = sshll.u32 (%p3029_p4), %s279_s18, 8 }
  0xaa   : > { %s288_s21 = ssub.s32 (%p3029_p4), 25, %s1429_s9  ;;  %s2518_s11 = scalar_lea.sflag (%p3029_p4), [#allocation8], %s279_s18 }
  0xab   : > { %p289_p11 = scmp.lt.s32.totalorder (%p3029_p4), %s288_s21, 16  ;;  %s283_s8 = scalar_lea.vmem (%p3029_p4), [#allocation7], %s1428_s23 }
  0xaf   : > { %s3065_s21 = smov (!%p289_p11, %s288_s21), 16 }
  0xb0   : > { %s2515_s10 = sshll.u32 %s3065_s21, 8 }
  0xb1   : > { %s294_s14 = ssub.s32 4096, %s2515_s10 }
  0xb2   : > { %295 = vsyncadd %s2518_s11, %s294_s14  ;;  %p1432_p9 = scmp.ne.s32.totalorder %s2515_s10, 0  ;;  %s1498_s17 = sshll.u32 %s2326_s15, 12 }
  0xb3   : > { %s2526_s20 = scalar_lea.hbm %s2985_s0, %s1498_s17  ;;  %s301_s12 = sshll.u32 %s283_s8, 4  ;;  %s2528_s12 = int_to_ptr.vmem [resolvable:$true] %s301_s12 }
  0xb4   : > { %s2042_s13 = scalar_lea.hbm %s2526_s20, %s2515_s10  ;;  %s2046_s15 = scalar_lea.hbm %s2985_s0, 6400 }
  0xb5   : > { %p2043_p0 = scmp.ne.s32.totalorder %s2526_s20, %s2042_s13  ;;  %p2047_p8 = scmp.lt.u32.totalorder %s2526_s20, %s2985_s0 }
  0xb6   : > { %p2048_p10 = scmp.lt.u32.totalorder %s2046_s15, %s2042_s13  ;;  %p2050_p5 = scmp.lt.u32.totalorder %s2042_s13, %s2526_s20 }
  0xb7   : > { %p2044_p1 = pnand %p2043_p0, %p1432_p9 }
  0xb8   : > { %p2049_p13 = por %p2048_p10, %p2047_p8 }
  0xb9   : > { %p2045_p2 = pneg %p2044_p1 }
  0xba   : > { %p2051_p7 = por %p2050_p5, %p2049_p13 }
  0xbc   : > { %p2052_p12 = pnand %p2051_p7, %p2045_p2 }
  0xbe   : > { %2055 = shalt.err (!%p2052_p12)
}
  0xbf   : > { %s2056_s9 = scalar_lea.vmem %s2528_s12, %s2515_s10  ;;  %s2215_s23 = smov [#allocation7]  }
  0xc0   : > { %p2057_p3 = scmp.ne.s32.totalorder %s2528_s12, %s2056_s9  ;;  %s2060_s21 = sshll.u32 %s2215_s23, 4  ;;  %s2061_s21 = int_to_ptr.vmem [resolvable:$false] %s2060_s21 }
  0xc1   : > { %s2062_s14 = scalar_lea.vmem %s2061_s21, 8192  ;;  %p2063_p11 = scmp.lt.s32.totalorder %s2528_s12, %s2061_s21 }
  0xc2   : > { %p2058_p6 = pnand %p2057_p3, %p1432_p9  ;;  %p2064_p0 = scmp.lt.s32.totalorder %s2062_s14, %s2056_s9 }
  0xc4   : > { %p2059_p4 = pneg %p2058_p6  ;;  %p2065_p1 = por %p2064_p0, %p2063_p11 }
  0xc6   : > { %p2066_p8 = pnand %p2065_p1, %p2059_p4 }
  0xc8   : > { %2069 = shalt.err (!%p2066_p8)
}
  0xc9   : > { %s2216_s8 = smov 256   ;;  %s2217_s17 = smov 16  }
  0xca   : > { %307 = dma.hbm_to_vmem [thread:$0]  (%p1432_p9), %s2526_s20, %s2515_s10, %s2528_s12, %s2518_s11, %s2216_s8, %s2216_s8, %s2217_s17  }
  0xcb PF: > { %p3030_p2 = scmp.ne.s32.totalorder %s3026_s6, 0 }
  0xcc   : > { %s3031_s19 = sld [smem:[#allocation32_spill]] (!%p3030_p2)  ;;  %s315_s27 = sand.u32 (!%p3030_p2), 1, %s2180_s25  }
  0xcd   : > { %313 = sbr.rel (%p3030_p2) target bundleno = 1169 (0x491), region = 44  ;;  %s1438_s13 = sshll.u32 (!%p3030_p2), %s315_s27, 8 }
  0xce   : > { %s316_s30 = scalar_lea.sflag (!%p3030_p2), [#allocation8], %s315_s27  ;;  %s2558_s24 = scalar_lea.vmem (!%p3030_p2), [#allocation7], %s1438_s13 }
  0xd2   : > { %p3032_p10 = scmp.ne.s32.totalorder (!%p3030_p2), %s3031_s19, 0 }
  0xd4   : > { %2143 = dma.done.wait (%p3032_p10), %s316_s30, 4096  }
  0xd5   : > { %2145 = vsyncadd (%p3032_p10), %s316_s30, 4294963200  ;;  %p3033_p13 = scmp.ne.s32.totalorder %s3015_s16, 0 }
  0xd7   : > { %2147 = dma.done.wait (%p3033_p13), [#allocation11], 2576  }
  0xd8   : > { %2149 = vsyncadd (%p3033_p13), [#allocation11], 4294964720 }
  0xd9   : > { %2151 = dma.done.wait (%p3033_p13), [#allocation14], 4112  }
  0xda   : > { %2153 = vsyncadd (%p3033_p13), [#allocation14], 4294963184 }
  0xdb   : > { %2155 = dma.done.wait (%p3033_p13), [#allocation17], 32  }
  0xdc   : > { %2157 = vsyncadd (%p3033_p13), [#allocation17], 4294967264  ;;  %s365_s6 = sand.u32 1, %s2168_s22   ;;  %s3034_s20 = sld [smem:[#allocation27_spill]] }
  0xdd   : > { %s1444_s10 = sshll.u32 %s365_s6, 8 }
  0xde   : > { %s2579_s11 = scalar_lea.vmem [#allocation18], %s1444_s10 }
  0xe2   : > { %p1445_p9 = scmp.ne.s32.totalorder %s3034_s20, 0 }
  0xe3   : > { %s3035_s12 = sld [smem:[#allocation26_spill]] (!%p1445_p9) }
  0xe4   : > { %387 = sbr.rel (%p1445_p9) target bundleno = 841 (0x349), region = 72 }
  0xe9   : > { %p1446_p5 = scmp.ne.s32.totalorder (!%p1445_p9), %s3035_s12, 0 }
  0xeb   : > { %391 = sbr.rel (%p1446_p5) target bundleno = 242 (0xf2), region = 76  ;;  %v2218_v0 = vmov (!%p1446_p5), 0.0  }
  0xec   : > { %392 = vst [vmem:[#allocation3] sm:$0xff] (!%p1446_p5), %v2218_v0  ;;  %393 = vst [vmem:[#allocation4] sm:$0xff] (!%p1446_p5), %v2218_v0 }
  0xf2 PF: > { %v426_v1 = vld [vmem:[#allocation10] sm:$0xff]  ;;  %v427_v2 = vld [vmem:[#allocation10 + $0x8] sm:$0xff]  ;;  %v428_v3 = vld [vmem:[#allocation10 + $0x10] sm:$0xff]  ;;  %v2219_v4 = vmov 0.0|0.0   ;;  %vm446_vm0 = vcmask 261120   ;;  %s3036_s16 = sld [smem:[#allocation26_spill]] }
  0xf3   : > { %1606 = vmatprep.subr.bf16.mxu0 %v2219_v4  ;;  %v1607_v5 = vpack.c.bf16 %v427_v2, %v426_v1  ;;  %v429_v6 = vld [vmem:[#allocation10 + $0x18] sm:$0xff]  ;;  %1636 = vmatprep.subr.bf16.mxu1 %v2219_v4  ;;  %v430_v8 = vld [vmem:[#allocation10 + $0x20] sm:$0xff]  ;;  %v431_v9 = vld [vmem:[#allocation10 + $0x28] sm:$0xff]  ;;  %vm2220_vm1 = vmmov 0   ;;  %v2221_v0 = vmov 0.0   ;;  %v641_v1 = vlaneseq }
  0xf4   : > { %v1610_v7 = vpack.c.bf16 %v429_v6, %v428_v3  ;;  %v395_v10 = vld [vmem:[%s2558_s24 + $0x8] sm:$0xff]  ;;  %v1613_v11 = vpack.c.bf16 %v431_v9, %v430_v8  ;;  %v432_v12 = vld [vmem:[#allocation10 + $0x30] sm:$0xff]  ;;  %v433_v13 = vld [vmem:[#allocation10 + $0x38] sm:$0xff]  ;;  %1568 = vmatprep.mubr.msk.f32.mxu1 %vm2220_vm1, %v2221_v0 }
  0xf5   : > { %1608 = vmatpush1.bf16.msra.mxu0 %v1607_v5  ;;  %1447 = vmatprep.mubr.msk.f32.mxu0 %vm446_vm0, %v395_v10  ;;  %v1616_v14 = vpack.c.bf16 %v433_v13, %v432_v12  ;;  %v434_v15 = vld [vmem:[#allocation10 + $0x40] sm:$0xff]  ;;  %v435_v16 = vld [vmem:[#allocation10 + $0x48] sm:$0xff]  ;;  %v436_v18 = vld [vmem:[#allocation10 + $0x50] sm:$0xff]  ;;  %v2645_v2 = vshrl.u32 %v641_v1, 7 }
  0xf6   : > { %1609 = vmatprep.subr.bf16.mxu0 %v2219_v4  ;;  %v1619_v17 = vpack.c.bf16 %v435_v16, %v434_v15  ;;  %v437_v19 = vld [vmem:[#allocation10 + $0x58] sm:$0xff]  ;;  %v438_v21 = vld [vmem:[#allocation10 + $0x60] sm:$0xff]  ;;  %v439_v22 = vld [vmem:[#allocation10 + $0x68] sm:$0xff] }
  0xf7   : > { %v1622_v20 = vpack.c.bf16 %v437_v19, %v436_v18  ;;  %v1625_v23 = vpack.c.bf16 %v439_v22, %v438_v21  ;;  %v440_v24 = vld [vmem:[#allocation10 + $0x70] sm:$0xff]  ;;  %v441_v25 = vld [vmem:[#allocation10 + $0x78] sm:$0xff]  ;;  %v442_v27 = vld [vmem:[#allocation10 + $0x80] sm:$0xff]  ;;  %v643_v5 = vadd.s32 8, %v2645_v2  ;;  %v644_v8 = vadd.s32 16, %v2645_v2 }
  0xf8   : > { %v1628_v26 = vpack.c.bf16 %v441_v25, %v440_v24  ;;  %v443_v28 = vld [vmem:[#allocation10 + $0x88] sm:$0xff]  ;;  %v444_v30 = vld [vmem:[#allocation10 + $0x90] sm:$0xff]  ;;  %v445_v31 = vld [vmem:[#allocation10 + $0x98] sm:$0xff]  ;;  %s1463_s15 = sshll.u32 %s3036_s16, 7  ;;  %v645_v12 = vadd.s32 24, %v2645_v2  ;;  %v646_v21 = vadd.s32 32, %v2645_v2 }
  0xf9   : > { %1611 = vmatpush1.bf16.msra.mxu0 %v1610_v7  ;;  %v1631_v29 = vpack.c.bf16 %v443_v28, %v442_v27  ;;  %v1634_v32 = vpack.c.bf16 %v445_v31, %v444_v30  ;;  %v394_v33 = vld [vmem:[%s2558_s24] sm:$0xff]  ;;  %v397_v34 = vld [vmem:[%s2558_s24 + $0x18] sm:$0xff]  ;;  %v396_v35 = vld [vmem:[%s2558_s24 + $0x10] sm:$0xff]  ;;  %v2647_v3 = vstv %s1463_s15  ;;  %s2655_s29 = scalar_lea.vmem [#allocation2], %s1463_s15  ;;  %p1480_p7 = scmp.ne.s32.totalorder %s3036_s16, 1 }
  0xfa   : > { %1612 = vmatprep.subr.bf16.mxu0 %v2219_v4  ;;  %v399_v36 = vld [vmem:[%s2558_s24 + $0x28] sm:$0xff]  ;;  %v398_v37 = vld [vmem:[%s2558_s24 + $0x20] sm:$0xff]  ;;  %v401_v38 = vld [vmem:[%s2558_s24 + $0x38] sm:$0xff]  ;;  %v659_v6 = vadd.s32 %v2647_v3, %v2645_v2  ;;  %v660_v7 = vadd.s32 %v2647_v3, %v643_v5  ;;  %v661_v13 = vadd.s32 %v2647_v3, %v644_v8  ;;  %v662_v18 = vadd.s32 %v2647_v3, %v645_v12 }
  0xfb   : > { %v400_v39 = vld [vmem:[%s2558_s24 + $0x30] sm:$0xff]  ;;  %v403_v40 = vld [vmem:[%s2558_s24 + $0x48] sm:$0xff]  ;;  %v402_v41 = vld [vmem:[%s2558_s24 + $0x40] sm:$0xff]  ;;  %v663_v27 = vadd.s32 %v2647_v3, %v646_v21  ;;  %v653_v8 = vadd.s32 88, %v2645_v2 }
  0xfc   : > { %v405_v42 = vld [vmem:[%s2558_s24 + $0x58] sm:$0xff]  ;;  %v404_v43 = vld [vmem:[%s2558_s24 + $0x50] sm:$0xff]  ;;  %v407_v44 = vld [vmem:[%s2558_s24 + $0x68] sm:$0xff]  ;;  %vm675_vm2 = vcmp.lt.s32.totalorder %v659_v6, 200  ;;  %vm676_vm3 = vcmp.lt.s32.totalorder %v660_v7, 200  ;;  %vm677_vm5 = vcmp.lt.s32.totalorder %v661_v13, 200 }
  0xfd   : > { %1614 = vmatpush1.bf16.msra.mxu0 %v1613_v11  ;;  %v406_v45 = vld [vmem:[%s2558_s24 + $0x60] sm:$0xff]  ;;  %v409_v46 = vld [vmem:[%s2558_s24 + $0x78] sm:$0xff]  ;;  %v408_v47 = vld [vmem:[%s2558_s24 + $0x70] sm:$0xff]  ;;  %vm678_vm6 = vcmp.lt.s32.totalorder %v662_v18, 200  ;;  %vm679_vm8 = vcmp.lt.s32.totalorder %v663_v27, 200 }
  0xfe   : > { %1615 = vmatprep.subr.bf16.mxu0 %v2219_v4  ;;  %v411_v48 = vld [vmem:[%s2558_s24 + $0x88] sm:$0xff]  ;;  %v410_v49 = vld [vmem:[%s2558_s24 + $0x80] sm:$0xff]  ;;  %v413_v50 = vld [vmem:[%s2558_s24 + $0x98] sm:$0xff] }
  0xff   : > { %v412_v51 = vld [vmem:[%s2558_s24 + $0x90] sm:$0xff]  ;;  %v415_v52 = vld [vmem:[%s2558_s24 + $0xa8] sm:$0xff]  ;;  %v414_v53 = vld [vmem:[%s2558_s24 + $0xa0] sm:$0xff] }
 0x100   : > { %v417_v54 = vld [vmem:[%s2558_s24 + $0xb8] sm:$0xff]  ;;  %v416_v55 = vld [vmem:[%s2558_s24 + $0xb0] sm:$0xff]  ;;  %v419_v56 = vld [vmem:[%s2558_s24 + $0xc8] sm:$0xff] }
 0x101   : > { %1617 = vmatpush1.bf16.msra.mxu0 %v1616_v14  ;;  %v418_v57 = vld [vmem:[%s2558_s24 + $0xc0] sm:$0xff]  ;;  %v421_v58 = vld [vmem:[%s2558_s24 + $0xd8] sm:$0xff]  ;;  %v420_v59 = vld [vmem:[%s2558_s24 + $0xd0] sm:$0xff] }
 0x102   : > { %1618 = vmatprep.subr.bf16.mxu0 %v2219_v4  ;;  %v423_v60 = vld [vmem:[%s2558_s24 + $0xe8] sm:$0xff]  ;;  %v422_v61 = vld [vmem:[%s2558_s24 + $0xe0] sm:$0xff]  ;;  %v425_v62 = vld [vmem:[%s2558_s24 + $0xf8] sm:$0xff] }
 0x103   : > { %v424_v63 = vld [vmem:[%s2558_s24 + $0xf0] sm:$0xff]  ;;  %vm1638_vm4 = vmpackc.low %vm676_vm3, %vm675_vm2 }
 0x104   : > { %vm1642_vm7 = vmpackc.low %vm678_vm6, %vm677_vm5 }
 0x105   : > { %1620 = vmatpush1.bf16.msra.mxu0 %v1619_v17 }
 0x106   : > { %1621 = vmatprep.subr.bf16.mxu0 %v2219_v4 }
 0x109   : > { %1623 = vmatpush1.bf16.msra.mxu0 %v1622_v20 }
 0x10a   : > { %1624 = vmatprep.subr.bf16.mxu0 %v2219_v4 }
 0x10d   : > { %1626 = vmatpush1.bf16.msra.mxu0 %v1625_v23 }
 0x10e   : > { %1627 = vmatprep.subr.bf16.mxu0 %v2219_v4 }
 0x111   : > { %1629 = vmatpush1.bf16.msra.mxu0 %v1628_v26  ;;  %v647_v26 = vadd.s32 40, %v2645_v2 }
 0x112   : > { %1630 = vmatprep.subr.bf16.mxu0 %v2219_v4 }
 0x115   : > { %1632 = vmatpush1.bf16.msra.mxu0 %v1631_v29 }
 0x116   : > { %1633 = vmatprep.subr.bf16.mxu0 %v2219_v4 }
 0x119   : > { %1635 = vmatpush1.bf16.msra.mxu0 %v1634_v32  ;;  %v664_v32 = vadd.s32 %v2647_v3, %v647_v26 }
 0x11b   : > { %vm680_vm9 = vcmp.lt.s32.totalorder %v664_v32, 200 }
 0x11c   : > { %560 = vmatmul.mubr.f32.vlgmr.msra.gmra.mrb[0].mxu0 %v394_v33  ;;  %vm1646_vm10 = vmpackc.low %vm680_vm9, %vm679_vm8 }
 0x11d   : > { %1448 = vmatprep.mubr.msk.f32.mxu0 %vm446_vm0, %v397_v34 }
 0x120   : > { %565 = vmatmul.mubr.f32.gmra.mrb[2].mxu0 %v396_v35  ;;  %v648_v35 = vadd.s32 48, %v2645_v2 }
 0x121   : > { %1449 = vmatprep.mubr.msk.f32.mxu0 %vm446_vm0, %v399_v36 }
 0x124   : > { %570 = vmatmul.mubr.f32.gmra.mrb[4].mxu0 %v398_v37 }
 0x125   : > { %1450 = vmatprep.mubr.msk.f32.mxu0 %vm446_vm0, %v401_v38 }
 0x128   : > { %575 = vmatmul.mubr.f32.gmra.mrb[6].mxu0 %v400_v39 }
 0x129   : > { %1451 = vmatprep.mubr.msk.f32.mxu0 %vm446_vm0, %v403_v40  ;;  %v649_v40 = vadd.s32 56, %v2645_v2 }
 0x12c   : > { %580 = vmatmul.mubr.f32.gmra.mrb[8].mxu0 %v402_v41  ;;  %v665_v41 = vadd.s32 %v2647_v3, %v648_v35 }
 0x12d   : > { %1452 = vmatprep.mubr.msk.f32.mxu0 %vm446_vm0, %v405_v42 }
 0x12e   : > { %vm681_vm11 = vcmp.lt.s32.totalorder %v665_v41, 200 }
 0x130   : > { %585 = vmatmul.mubr.f32.gmra.mrb[10].mxu0 %v404_v43 }
 0x131   : > { %1453 = vmatprep.mubr.msk.f32.mxu0 %vm446_vm0, %v407_v44 }
 0x134   : > { %590 = vmatmul.mubr.f32.gmra.mrb[12].mxu0 %v406_v45 }
 0x135   : > { %1454 = vmatprep.mubr.msk.f32.mxu0 %vm446_vm0, %v409_v46  ;;  %v666_v46 = vadd.s32 %v2647_v3, %v649_v40 }
 0x137   : > { %vm682_vm12 = vcmp.lt.s32.totalorder %v666_v46, 200 }
 0x138   : > { %595 = vmatmul.mubr.f32.gmra.mrb[14].mxu0 %v408_v47  ;;  %vm1650_vm13 = vmpackc.low %vm682_vm12, %vm681_vm11 }
 0x139   : > { %1455 = vmatprep.mubr.msk.f32.mxu0 %vm446_vm0, %v411_v48 }
 0x13c   : > { %600 = vmatmul.mubr.f32.gmra.mrb[16].mxu0 %v410_v49  ;;  %v650_v49 = vadd.s32 64, %v2645_v2 }
 0x13d   : > { %1456 = vmatprep.mubr.msk.f32.mxu0 %vm446_vm0, %v413_v50 }
 0x140   : > { %605 = vmatmul.mubr.f32.gmra.mrb[18].mxu0 %v412_v51 }
 0x141   : > { %1457 = vmatprep.mubr.msk.f32.mxu0 %vm446_vm0, %v415_v52 }
 0x144   : > { %610 = vmatmul.mubr.f32.gmra.mrb[20].mxu0 %v414_v53 }
 0x145   : > { %1458 = vmatprep.mubr.msk.f32.mxu0 %vm446_vm0, %v417_v54  ;;  %v651_v54 = vadd.s32 72, %v2645_v2 }
 0x148   : > { %615 = vmatmul.mubr.f32.gmra.mrb[22].mxu0 %v416_v55  ;;  %v667_v55 = vadd.s32 %v2647_v3, %v650_v49 }
 0x149   : > { %1459 = vmatprep.mubr.msk.f32.mxu0 %vm446_vm0, %v419_v56 }
 0x14a   : > { %vm683_vm14 = vcmp.lt.s32.totalorder %v667_v55, 200 }
 0x14c   : > { %620 = vmatmul.mubr.f32.gmra.mrb[24].mxu0 %v418_v57 }
 0x14d   : > { %1460 = vmatprep.mubr.msk.f32.mxu0 %vm446_vm0, %v421_v58 }
 0x150   : > { %625 = vmatmul.mubr.f32.gmra.mrb[26].mxu0 %v420_v59 }
 0x151   : > { %1461 = vmatprep.mubr.msk.f32.mxu0 %vm446_vm0, %v423_v60  ;;  %v668_v60 = vadd.s32 %v2647_v3, %v651_v54 }
 0x153   : > { %vm684_vm15 = vcmp.lt.s32.totalorder %v668_v60, 200 }
 0x154   : > { %630 = vmatmul.mubr.f32.gmra.mrb[28].mxu0 %v422_v61 }
 0x155   : > { %1462 = vmatprep.mubr.msk.f32.mxu0 %vm446_vm0, %v425_v62  ;;  %vm1654_vm0 = vmpackc.low %vm684_vm15, %vm683_vm14 }
 0x158   : > { %635 = vmatmul.mubr.f32.gmra.mrb[30].mxu0 %v424_v63  ;;  %v652_v63 = vadd.s32 80, %v2645_v2 }
 0x1ef   : > { %v561_v9 = vpop.f32.mrb[0].mxu0 }
 0x1f0   : > { %v723_v10 = vsel %vm675_vm2, %v561_v9, 0.0  ;;  %v563_v11 = vpop.f32.mrb[1].mxu0 }
 0x1f1   : > { %902 = vst [vmem:[%s2655_s29] sm:$0xff] %v723_v10  ;;  %v2660_v19 = vmul.f32 %v723_v10, %v723_v10 }
 0x1f3   : > { %v566_v14 = vpop.f32.mrb[2].mxu0 }
 0x1f4   : > { %v724_v15 = vsel %vm676_vm3, %v566_v14, 0.0  ;;  %v1637_v16 = vpack.c.bf16 %v566_v14, %v561_v9  ;;  %v568_v17 = vpop.f32.mrb[3].mxu0  ;;  %v669_v9 = vadd.s32 %v2647_v3, %v652_v63  ;;  %v670_v14 = vadd.s32 %v2647_v3, %v653_v8 }
 0x1f5   : > { %v2662_v20 = vmul.f32 %v724_v15, %v724_v15  ;;  %903 = vst [vmem:[%s2655_s29 + $0x8] sm:$0xff] %v724_v15  ;;  %v654_v17 = vadd.s32 96, %v2645_v2 }
 0x1f6   : > { %1639 = vmatpush3.bf16.msk.msra.mxu1 %vm1638_vm4, %v1637_v16  ;;  %vm685_vm2 = vcmp.lt.s32.totalorder %v669_v9, 200  ;;  %vm686_vm3 = vcmp.lt.s32.totalorder %v670_v14, 200  ;;  %v929_v9 = vld [vmem:[#allocation12] sm:$0x1] (!%p1480_p7) }
 0x1f7   : > { %v1669_v22 = vpack.c.bf16 %v2662_v20, %v2660_v19  ;;  %v571_v23 = vpop.f32.mrb[4].mxu0  ;;  %1640 = vmatprep.subr.bf16.mxu1 %v2219_v4  ;;  %v671_v26 = vadd.s32 %v2647_v3, %v654_v17  ;;  %vm1658_vm4 = vmpackc.low %vm686_vm3, %vm685_vm2 }
 0x1f8   : > { %v725_v24 = vsel %vm677_vm5, %v571_v23, 0.0  ;;  %v573_v25 = vpop.f32.mrb[5].mxu0 }
 0x1f9   : > { %904 = vst [vmem:[%s2655_s29 + $0x10] sm:$0xff] %v725_v24  ;;  %v2673_v33 = vmul.f32 %v725_v24, %v725_v24  ;;  %v655_v25 = vadd.s32 104, %v2645_v2  ;;  %vm687_vm5 = vcmp.lt.s32.totalorder %v671_v26, 200 }
 0x1fb   : > { %v576_v28 = vpop.f32.mrb[6].mxu0 }
 0x1fc   : > { %v726_v29 = vsel %vm678_vm6, %v576_v28, 0.0  ;;  %v1641_v30 = vpack.c.bf16 %v576_v28, %v571_v23  ;;  %v578_v31 = vpop.f32.mrb[7].mxu0 }
 0x1fd   : > { %v2675_v34 = vmul.f32 %v726_v29, %v726_v29  ;;  %905 = vst [vmem:[%s2655_s29 + $0x18] sm:$0xff] %v726_v29  ;;  %v672_v31 = vadd.s32 %v2647_v3, %v655_v25 }
 0x1fe   : > { %1643 = vmatpush3.bf16.msk.msra.mxu1 %vm1642_vm7, %v1641_v30 }
 0x1ff   : > { %v1672_v36 = vpack.c.bf16 %v2675_v34, %v2673_v33  ;;  %v581_v37 = vpop.f32.mrb[8].mxu0  ;;  %1644 = vmatprep.subr.bf16.mxu1 %v2219_v4  ;;  %vm688_vm6 = vcmp.lt.s32.totalorder %v672_v31, 200  ;;  %v812_v33 = vld [vmem:[#allocation4] sm:$0xff] }
 0x200   : > { %v727_v38 = vsel %vm679_vm8, %v581_v37, 0.0  ;;  %v583_v39 = vpop.f32.mrb[9].mxu0  ;;  %vm1662_vm7 = vmpackc.low %vm688_vm6, %vm687_vm5 }
 0x201   : > { %906 = vst [vmem:[%s2655_s29 + $0x20] sm:$0xff] %v727_v38  ;;  %v2686_v47 = vmul.f32 %v727_v38, %v727_v38 }
 0x203   : > { %v586_v42 = vpop.f32.mrb[10].mxu0 }
 0x204   : > { %v728_v43 = vsel %vm680_vm9, %v586_v42, 0.0  ;;  %v1645_v44 = vpack.c.bf16 %v586_v42, %v581_v37  ;;  %v588_v45 = vpop.f32.mrb[11].mxu0  ;;  %v656_v37 = vadd.s32 112, %v2645_v2  ;;  %v657_v42 = vadd.s32 120, %v2645_v2 }
 0x205   : > { %v2688_v48 = vmul.f32 %v728_v43, %v728_v43  ;;  %907 = vst [vmem:[%s2655_s29 + $0x28] sm:$0xff] %v728_v43 }
 0x206   : > { %1647 = vmatpush3.bf16.msk.msra.mxu1 %vm1646_vm10, %v1645_v44  ;;  %v673_v43 = vadd.s32 %v2647_v3, %v656_v37 }
 0x207   : > { %v1675_v50 = vpack.c.bf16 %v2688_v48, %v2686_v47  ;;  %v591_v51 = vpop.f32.mrb[12].mxu0  ;;  %1648 = vmatprep.subr.bf16.mxu1 %v2219_v4 }
 0x208   : > { %v729_v52 = vsel %vm681_vm11, %v591_v51, 0.0  ;;  %v593_v53 = vpop.f32.mrb[13].mxu0  ;;  %vm689_vm8 = vcmp.lt.s32.totalorder %v673_v43, 200 }
 0x209   : > { %908 = vst [vmem:[%s2655_s29 + $0x30] sm:$0xff] %v729_v52  ;;  %v2699_v61 = vmul.f32 %v729_v52, %v729_v52 }
 0x20b   : > { %v596_v56 = vpop.f32.mrb[14].mxu0 }
 0x20c   : > { %v730_v57 = vsel %vm682_vm12, %v596_v56, 0.0  ;;  %v1649_v58 = vpack.c.bf16 %v596_v56, %v591_v51  ;;  %v598_v59 = vpop.f32.mrb[15].mxu0  ;;  %v674_v51 = vadd.s32 %v2647_v3, %v657_v42 }
 0x20d   : > { %v2701_v62 = vmul.f32 %v730_v57, %v730_v57  ;;  %909 = vst [vmem:[%s2655_s29 + $0x38] sm:$0xff] %v730_v57 }
 0x20e   : > { %1651 = vmatpush3.bf16.msk.msra.mxu1 %vm1650_vm13, %v1649_v58  ;;  %vm690_vm9 = vcmp.lt.s32.totalorder %v674_v51, 200 }
 0x20f   : > { %v1678_v1 = vpack.c.bf16 %v2701_v62, %v2699_v61  ;;  %v601_v5 = vpop.f32.mrb[16].mxu0  ;;  %1652 = vmatprep.subr.bf16.mxu1 %v2219_v4  ;;  %vm1666_vm10 = vmpackc.low %vm690_vm9, %vm689_vm8 }
 0x210   : > { %v731_v6 = vsel %vm683_vm14, %v601_v5, 0.0  ;;  %v603_v7 = vpop.f32.mrb[17].mxu0 }
 0x211   : > { %910 = vst [vmem:[%s2655_s29 + $0x40] sm:$0xff] %v731_v6  ;;  %v2712_v15 = vmul.f32 %v731_v6, %v731_v6  ;;  %v2222_v6 = vmov 1.0  }
 0x213   : > { %v606_v10 = vpop.f32.mrb[18].mxu0 }
 0x214   : > { %v732_v11 = vsel %vm684_vm15, %v606_v10, 0.0  ;;  %v1653_v12 = vpack.c.bf16 %v606_v10, %v601_v5  ;;  %v608_v13 = vpop.f32.mrb[19].mxu0 }
 0x215   : > { %v2714_v16 = vmul.f32 %v732_v11, %v732_v11  ;;  %911 = vst [vmem:[%s2655_s29 + $0x48] sm:$0xff] %v732_v11 }
 0x216   : > { %1655 = vmatpush3.bf16.msk.msra.mxu1 %vm1654_vm0, %v1653_v12  ;;  %v934_v12 = vld [vmem:[#allocation13] sm:$0x1] (!%p1480_p7) }
 0x217   : > { %v1681_v18 = vpack.c.bf16 %v2714_v16, %v2712_v15  ;;  %v611_v21 = vpop.f32.mrb[20].mxu0  ;;  %1656 = vmatprep.subr.bf16.mxu1 %v2219_v4 }
 0x218   : > { %v733_v23 = vsel %vm685_vm2, %v611_v21, 0.0  ;;  %v613_v24 = vpop.f32.mrb[21].mxu0 }
 0x219   : > { %912 = vst [vmem:[%s2655_s29 + $0x50] sm:$0xff] %v733_v23  ;;  %v823_v32 = vmul.f32 %v733_v23, %v733_v23 }
 0x21b   : > { %v616_v27 = vpop.f32.mrb[22].mxu0 }
 0x21c   : > { %v734_v28 = vsel %vm686_vm3, %v616_v27, 0.0  ;;  %v1657_v29 = vpack.c.bf16 %v616_v27, %v611_v21  ;;  %v618_v30 = vpop.f32.mrb[23].mxu0 }
 0x21d   : > { %v824_v35 = vmul.f32 %v734_v28, %v734_v28  ;;  %913 = vst [vmem:[%s2655_s29 + $0x58] sm:$0xff] %v734_v28 }
 0x21e   : > { %1659 = vmatpush3.bf16.msk.msra.mxu1 %vm1658_vm4, %v1657_v29 }
 0x21f   : > { %v1684_v38 = vpack.c.bf16 %v824_v35, %v823_v32  ;;  %v621_v39 = vpop.f32.mrb[24].mxu0  ;;  %1660 = vmatprep.subr.bf16.mxu1 %v2219_v4 }
 0x220   : > { %v735_v40 = vsel %vm687_vm5, %v621_v39, 0.0  ;;  %v623_v41 = vpop.f32.mrb[25].mxu0 }
 0x221   : > { %914 = vst [vmem:[%s2655_s29 + $0x60] sm:$0xff] %v735_v40  ;;  %v825_v52 = vmul.f32 %v735_v40, %v735_v40 }
 0x223   : > { %v626_v44 = vpop.f32.mrb[26].mxu0 }
 0x224   : > { %v736_v45 = vsel %vm688_vm6, %v626_v44, 0.0  ;;  %v1661_v46 = vpack.c.bf16 %v626_v44, %v621_v39  ;;  %v628_v49 = vpop.f32.mrb[27].mxu0 }
 0x225   : > { %v826_v53 = vmul.f32 %v736_v45, %v736_v45  ;;  %915 = vst [vmem:[%s2655_s29 + $0x68] sm:$0xff] %v736_v45 }
 0x226   : > { %1663 = vmatpush3.bf16.msk.msra.mxu1 %vm1662_vm7, %v1661_v46 }
 0x227   : > { %v1687_v54 = vpack.c.bf16 %v826_v53, %v825_v52  ;;  %v631_v55 = vpop.f32.mrb[28].mxu0  ;;  %1664 = vmatprep.subr.bf16.mxu1 %v2219_v4 }
 0x228   : > { %v737_v2 = vsel %vm689_vm8, %v631_v55, 0.0  ;;  %v633_v56 = vpop.f32.mrb[29].mxu0 }
 0x229   : > { %916 = vst [vmem:[%s2655_s29 + $0x70] sm:$0xff] %v737_v2  ;;  %v827_v3 = vmul.f32 %v737_v2, %v737_v2 }
 0x22b   : > { %v636_v57 = vpop.f32.mrb[30].mxu0 }
 0x22c   : > { %v738_v58 = vsel %vm690_vm9, %v636_v57, 0.0  ;;  %v1665_v59 = vpack.c.bf16 %v636_v57, %v631_v55  ;;  %v638_v60 = vpop.f32.mrb[31].mxu0 }
 0x22d   : > { %v828_v63 = vmul.f32 %v738_v58, %v738_v58  ;;  %917 = vst [vmem:[%s2655_s29 + $0x78] sm:$0xff] %v738_v58 }
 0x22e   : > { %1667 = vmatpush3.bf16.msk.msra.mxu1 %vm1666_vm10, %v1665_v59 }
 0x22f   : > { %v1690_v5 = vpack.c.bf16 %v828_v63, %v827_v3  ;;  %1668 = vmatprep.subr.bf16.mxu1 %v2219_v4 }
 0x231   : > { %1569 = vmatmul.mubr.f32.vlgmr.msra.gmra.mrb[0].mxu1 %v2222_v6 }
 0x232   : > { %1670 = vmatpush3.bf16.msra.mxu1 %v1669_v22  ;;  %1603 = vmatprep.mubr.msk.f32.mxu1 %vm2220_vm1, %v2221_v0  ;;  %v739_v0 = vld [vmem:[#allocation3] sm:$0xff] }
 0x233   : > { %1671 = vmatprep.subr.bf16.mxu1 %v2219_v4 }
 0x236   : > { %1673 = vmatpush3.bf16.msra.mxu1 %v1672_v36 }
 0x237   : > { %1674 = vmatprep.subr.bf16.mxu1 %v2219_v4 }
 0x23a   : > { %1676 = vmatpush3.bf16.msra.mxu1 %v1675_v50 }
 0x23b   : > { %1677 = vmatprep.subr.bf16.mxu1 %v2219_v4 }
 0x23e   : > { %1679 = vmatpush3.bf16.msra.mxu1 %v1678_v1 }
 0x23f   : > { %1680 = vmatprep.subr.bf16.mxu1 %v2219_v4 }
 0x242   : > { %1682 = vmatpush3.bf16.msra.mxu1 %v1681_v18 }
 0x243   : > { %1683 = vmatprep.subr.bf16.mxu1 %v2219_v4 }
 0x246   : > { %1685 = vmatpush3.bf16.msra.mxu1 %v1684_v38 }
 0x247   : > { %1686 = vmatprep.subr.bf16.mxu1 %v2219_v4 }
 0x24a   : > { %1688 = vmatpush3.bf16.msra.mxu1 %v1687_v54 }
 0x24b   : > { %1689 = vmatprep.subr.bf16.mxu1 %v2219_v4 }
 0x24e   : > { %1691 = vmatpush3.bf16.msra.mxu1 %v1690_v5 }
 0x251   : > { %1604 = vmatmul.mubr.f32.vlgmr.msra.gmra.mrb[2].mxu1 %v2222_v6 }
 0x304   : > { %v806_v19 = vpop.f32.mrb[0].mxu1 }
 0x305   : > { %v810_v20 = vadd.f32 %v806_v19, %v739_v0  ;;  %v1570_v22 = vpop.f32.mrb[1].mxu1 }
 0x307   : > { %811 = vst [vmem:[#allocation3] sm:$0xff] %v810_v20 }
 0x30e   : > { %v922_v48 = vld [vmem:[#allocation3] sm:$0x1] (!%p1480_p7) }
 0x30f   : > { %v923_v61 = vmul.f32 (!%p1480_p7), 0.005, %v922_v48 }
 0x311   : > { %v926_v4 = vmul.f32 (!%p1480_p7), %v923_v61, %v923_v61 }
 0x321   : > { %921 = sbr.rel (%p1480_p7) target bundleno = 841 (0x349), region = 80 }
 0x324   : > { %v895_v34 = vpop.f32.mrb[2].mxu1 }
 0x325   : > { %v899_v36 = vadd.f32 %v895_v34, %v812_v33  ;;  %v1605_v47 = vpop.f32.mrb[3].mxu1 }
 0x327   : > { %900 = vst [vmem:[#allocation4] sm:$0xff] %v899_v36 }
 0x32e   : > { %v924_v50 = vld [vmem:[#allocation4] sm:$0x1] }
 0x32f   : > { %v925_v62 = vmul.f32 0.005, %v924_v50 }
 0x331   : > { %v927_v1 = vsub.f32 %v925_v62, %v926_v4 }
 0x333   : > { %v928_v7 = vmax.f32 %v927_v1, 0.0 }
 0x335   : > { %v930_v8 = vadd.f32 1e-05, %v928_v7 }
 0x337   : > { %1900 = vrsqrt.f32 %v930_v8 }
 0x341   : > { %v1901_v10 = vpop.eup %1900 }
 0x342   : > { %v932_v11 = vmul.f32 %v1901_v10, %v929_v9 }
 0x344   : > { %933 = vst [vmem:[#allocation5] sm:$0x1] %v932_v11  ;;  %v935_v13 = vmul.f32 %v932_v11, %v923_v61 }
 0x346   : > { %v936_v14 = vsub.f32 %v934_v12, %v935_v13 }
 0x348   : > { %937 = vst [vmem:[#allocation6] sm:$0x1] %v936_v14 }
 0x349 PF: > { %s3037_s18 = sld [smem:[#allocation27_spill]] }
 0x34f   : > { %p1481_p12 = scmp.ne.s32.totalorder %s3037_s18, 1 }
 0x350   : > { %v1023_v15 = vld [vmem:[#allocation15 + $0x8] sm:$0xff] (!%p1481_p12)  ;;  %v1025_v16 = vld [vmem:[#allocation15 + $0x18] sm:$0xff] (!%p1481_p12)  ;;  %v1022_v17 = vld [vmem:[#allocation15] sm:$0xff] (!%p1481_p12)  ;;  %v2223_v25 = vmov (!%p1481_p12), 0.0   ;;  %s3038_s9 = sld [smem:[#allocation26_spill]] (!%p1481_p12) }
 0x351   : > { %941 = sbr.rel (%p1481_p12) target bundleno = 1127 (0x467), region = 84  ;;  %v1692_v18 = vpack.c.bf16 (!%p1481_p12), %v1025_v16, %v1023_v15  ;;  %v1024_v21 = vld [vmem:[#allocation15 + $0x10] sm:$0xff] (!%p1481_p12)  ;;  %v1027_v23 = vld [vmem:[#allocation15 + $0x28] sm:$0xff] (!%p1481_p12)  ;;  %v1029_v24 = vld [vmem:[#allocation15 + $0x38] sm:$0xff] (!%p1481_p12)  ;;  %1130 = vmatprep.mubr.f32.mxu0 (!%p1481_p12), %v2223_v25  ;;  %1178 = vmatprep.mubr.f32.mxu1 (!%p1481_p12), %v2223_v25 }
 0x352   : > { %v1694_v26 = vpack.c.bf16 (!%p1481_p12), %v1024_v21, %v1022_v17  ;;  %v1696_v27 = vpack.c.bf16 (!%p1481_p12), %v1029_v24, %v1027_v23  ;;  %v1026_v28 = vld [vmem:[#allocation15 + $0x20] sm:$0xff] (!%p1481_p12)  ;;  %v1028_v29 = vld [vmem:[#allocation15 + $0x30] sm:$0xff] (!%p1481_p12)  ;;  %v1031_v30 = vld [vmem:[#allocation15 + $0x48] sm:$0xff] (!%p1481_p12) }
 0x353   : > { %1693 = vmatprep.subr.bf16.mxu0 (!%p1481_p12), %v1692_v18  ;;  %1724 = vmatprep.subr.bf16.mxu1 (!%p1481_p12), %v1692_v18  ;;  %v1033_v31 = vld [vmem:[#allocation15 + $0x58] sm:$0xff] (!%p1481_p12)  ;;  %v1698_v32 = vpack.c.bf16 (!%p1481_p12), %v1028_v29, %v1026_v28  ;;  %v1030_v37 = vld [vmem:[#allocation15 + $0x40] sm:$0xff] (!%p1481_p12)  ;;  %v1032_v38 = vld [vmem:[#allocation15 + $0x50] sm:$0xff] (!%p1481_p12) }
 0x354   : > { %1695 = vmatpush1.bf16.msra.mxu0 (!%p1481_p12), %v1694_v26  ;;  %1732 = vmatpush1.bf16.msra.mxu1 (!%p1481_p12), %v1694_v26  ;;  %v1700_v35 = vpack.c.bf16 (!%p1481_p12), %v1033_v31, %v1031_v30  ;;  %v1035_v39 = vld [vmem:[#allocation15 + $0x68] sm:$0xff] (!%p1481_p12)  ;;  %v1037_v40 = vld [vmem:[#allocation15 + $0x78] sm:$0xff] (!%p1481_p12)  ;;  %v1702_v41 = vpack.c.bf16 (!%p1481_p12), %v1032_v38, %v1030_v37  ;;  %v1034_v43 = vld [vmem:[#allocation15 + $0x60] sm:$0xff] (!%p1481_p12) }
 0x355   : > { %1697 = vmatprep.subr.bf16.mxu0 (!%p1481_p12), %v1696_v27  ;;  %1725 = vmatprep.subr.bf16.mxu1 (!%p1481_p12), %v1696_v27  ;;  %v1704_v42 = vpack.c.bf16 (!%p1481_p12), %v1037_v40, %v1035_v39  ;;  %v1036_v44 = vld [vmem:[#allocation15 + $0x70] sm:$0xff] (!%p1481_p12)  ;;  %v1039_v45 = vld [vmem:[#allocation15 + $0x88] sm:$0xff] (!%p1481_p12)  ;;  %v1041_v46 = vld [vmem:[#allocation15 + $0x98] sm:$0xff] (!%p1481_p12) }
 0x356   : > { %v1706_v49 = vpack.c.bf16 (!%p1481_p12), %v1036_v44, %v1034_v43  ;;  %v1708_v51 = vpack.c.bf16 (!%p1481_p12), %v1041_v46, %v1039_v45  ;;  %v1038_v52 = vld [vmem:[#allocation15 + $0x80] sm:$0xff] (!%p1481_p12)  ;;  %v1040_v53 = vld [vmem:[#allocation15 + $0x90] sm:$0xff] (!%p1481_p12)  ;;  %v1043_v54 = vld [vmem:[#allocation15 + $0xa8] sm:$0xff] (!%p1481_p12)  ;;  %s1482_s23 = sshll.u32 (!%p1481_p12), %s3038_s9, 7 }
 0x357   : > { %v1045_v55 = vld [vmem:[#allocation15 + $0xb8] sm:$0xff] (!%p1481_p12)  ;;  %v1710_v2 = vpack.c.bf16 (!%p1481_p12), %v1040_v53, %v1038_v52  ;;  %v1042_v57 = vld [vmem:[#allocation15 + $0xa0] sm:$0xff] (!%p1481_p12)  ;;  %v1044_v58 = vld [vmem:[#allocation15 + $0xb0] sm:$0xff] (!%p1481_p12)  ;;  %s2766_s21 = scalar_lea.vmem (!%p1481_p12), [#allocation2], %s1482_s23 }
 0x358   : > { %1699 = vmatpush1.bf16.msra.mxu0 %v1698_v32  ;;  %1733 = vmatpush1.bf16.msra.mxu1 %v1698_v32  ;;  %v1712_v56 = vpack.c.bf16 %v1045_v55, %v1043_v54  ;;  %v1047_v59 = vld [vmem:[#allocation15 + $0xc8] sm:$0xff]  ;;  %v1049_v60 = vld [vmem:[#allocation15 + $0xd8] sm:$0xff]  ;;  %v1714_v3 = vpack.c.bf16 %v1044_v58, %v1042_v57  ;;  %v1046_v19 = vld [vmem:[#allocation15 + $0xc0] sm:$0xff] }
 0x359   : > { %1701 = vmatprep.subr.bf16.mxu0 %v1700_v35  ;;  %1726 = vmatprep.subr.bf16.mxu1 %v1700_v35  ;;  %v944_v63 = vld [vmem:[%s2766_s21] sm:$0xff]  ;;  %v2769_v5 = vld [vmem:[#allocation5] ss:$0 sm:$0xff]  ;;  %v1716_v0 = vpack.c.bf16 %v1049_v60, %v1047_v59  ;;  %v2774_v48 = vld [vmem:[#allocation6] ss:$0 sm:$0xff] }
 0x35a   : > { %v952_v6 = vld [vmem:[%s2766_s21 + $0x40] sm:$0xff]  ;;  %v1053_v33 = vld [vmem:[#allocation15 + $0xf8] sm:$0xff]  ;;  %v967_v34 = vmul.f32 %v2769_v5, %v944_v63  ;;  %v1050_v4 = vld [vmem:[#allocation15 + $0xe0] sm:$0xff] }
 0x35b   : > { %v1048_v20 = vld [vmem:[#allocation15 + $0xd0] sm:$0xff]  ;;  %v1051_v22 = vld [vmem:[#allocation15 + $0xe8] sm:$0xff]  ;;  %v975_v36 = vmul.f32 %v2769_v5, %v952_v6  ;;  %v946_v11 = vld [vmem:[%s2766_s21 + $0x10] sm:$0xff] }
 0x35c   : > { %1703 = vmatpush1.bf16.msra.mxu0 %v1702_v41  ;;  %1734 = vmatpush1.bf16.msra.mxu1 %v1702_v41  ;;  %v1718_v47 = vpack.c.bf16 %v1048_v20, %v1046_v19  ;;  %v945_v50 = vld [vmem:[%s2766_s21 + $0x8] sm:$0xff]  ;;  %v1720_v62 = vpack.c.bf16 %v1053_v33, %v1051_v22  ;;  %v990_v7 = vadd.f32 %v2774_v48, %v967_v34  ;;  %v954_v12 = vld [vmem:[%s2766_s21 + $0x50] sm:$0xff]  ;;  %v947_v23 = vld [vmem:[%s2766_s21 + $0x18] sm:$0xff] }
 0x35d   : > { %1705 = vmatprep.subr.bf16.mxu0 %v1704_v42  ;;  %1727 = vmatprep.subr.bf16.mxu1 %v1704_v42  ;;  %v953_v61 = vld [vmem:[%s2766_s21 + $0x48] sm:$0xff]  ;;  %v998_v8 = vadd.f32 %v2774_v48, %v975_v36  ;;  %v968_v9 = vmul.f32 %v2769_v5, %v945_v50  ;;  %v969_v14 = vmul.f32 %v2769_v5, %v946_v11  ;;  %v955_v24 = vld [vmem:[%s2766_s21 + $0x58] sm:$0xff]  ;;  %v948_v32 = vld [vmem:[%s2766_s21 + $0x20] sm:$0xff] }
 0x35e   : > { %v1052_v1 = vld [vmem:[#allocation15 + $0xf0] sm:$0xff]  ;;  %v976_v10 = vmul.f32 %v2769_v5, %v953_v61  ;;  %v977_v15 = vmul.f32 %v2769_v5, %v954_v12  ;;  %v1006_v16 = vmax.f32 %v990_v7, 0.0  ;;  %v970_v27 = vmul.f32 %v2769_v5, %v947_v23  ;;  %v950_v54 = vld [vmem:[%s2766_s21 + $0x30] sm:$0xff]  ;;  %v959_v63 = vld [vmem:[%s2766_s21 + $0x78] sm:$0xff] }
 0x35f   : > { %v1722_v13 = vpack.c.bf16 %v1052_v1, %v1050_v4  ;;  %v1014_v17 = vmax.f32 %v998_v8, 0.0  ;;  %v991_v18 = vadd.f32 %v2774_v48, %v968_v9  ;;  %v992_v26 = vadd.f32 %v2774_v48, %v969_v14  ;;  %v956_v35 = vld [vmem:[%s2766_s21 + $0x60] sm:$0xff]  ;;  %v949_v43 = vld [vmem:[%s2766_s21 + $0x28] sm:$0xff]  ;;  %v958_v55 = vld [vmem:[%s2766_s21 + $0x70] sm:$0xff] }
 0x360   : > { %1707 = vmatpush1.bf16.msra.mxu0 %v1706_v49  ;;  %1735 = vmatpush1.bf16.msra.mxu1 %v1706_v49  ;;  %v999_v21 = vadd.f32 %v2774_v48, %v976_v10  ;;  %v1000_v30 = vadd.f32 %v2774_v48, %v977_v15  ;;  %v978_v31 = vmul.f32 %v2769_v5, %v955_v24  ;;  %v957_v44 = vld [vmem:[%s2766_s21 + $0x68] sm:$0xff]  ;;  %v1054_v1 = vld [vmem:[#allocation16] sm:$0x3] }
 0x361   : > { %1709 = vmatprep.subr.bf16.mxu0 %v1708_v51  ;;  %1728 = vmatprep.subr.bf16.mxu1 %v1708_v51  ;;  %v1007_v28 = vmax.f32 %v991_v18, 0.0  ;;  %v1008_v37 = vmax.f32 %v992_v26, 0.0  ;;  %v993_v38 = vadd.f32 %v2774_v48, %v970_v27  ;;  %v971_v41 = vmul.f32 %v2769_v5, %v948_v32 }
 0x362   : > { %v1015_v29 = vmax.f32 %v999_v21, 0.0  ;;  %v1016_v39 = vmax.f32 %v1000_v30, 0.0  ;;  %v1001_v40 = vadd.f32 %v2774_v48, %v978_v31  ;;  %v979_v42 = vmul.f32 %v2769_v5, %v956_v35 }
 0x363   : > { %v1009_v45 = vmax.f32 %v993_v38, 0.0  ;;  %v972_v46 = vmul.f32 %v2769_v5, %v949_v43  ;;  %v994_v51 = vadd.f32 %v2774_v48, %v971_v41  ;;  %v980_v53 = vmul.f32 %v2769_v5, %v957_v44 }
 0x364   : > { %1711 = vmatpush1.bf16.msra.mxu0 %v1710_v2  ;;  %1736 = vmatpush1.bf16.msra.mxu1 %v1710_v2  ;;  %v1017_v49 = vmax.f32 %v1001_v40, 0.0  ;;  %v1002_v52 = vadd.f32 %v2774_v48, %v979_v42  ;;  %v973_v2 = vmul.f32 %v2769_v5, %v950_v54  ;;  %v982_v33 = vmul.f32 %v2769_v5, %v959_v63 }
 0x365   : > { %1713 = vmatprep.subr.bf16.mxu0 %v1712_v56  ;;  %1729 = vmatprep.subr.bf16.mxu1 %v1712_v56  ;;  %v981_v56 = vmul.f32 %v2769_v5, %v958_v55  ;;  %v1010_v57 = vmax.f32 %v994_v51, 0.0  ;;  %v995_v59 = vadd.f32 %v2774_v48, %v972_v46  ;;  %v1003_v60 = vadd.f32 %v2774_v48, %v980_v53 }
 0x366   : > { %v1018_v58 = vmax.f32 %v1002_v52, 0.0  ;;  %v996_v6 = vadd.f32 %v2774_v48, %v973_v2  ;;  %v1005_v50 = vadd.f32 %v2774_v48, %v982_v33 }
 0x367   : > { %v1011_v19 = vmax.f32 %v995_v59, 0.0  ;;  %v1019_v20 = vmax.f32 %v1003_v60, 0.0 }
 0x368   : > { %1715 = vmatpush1.bf16.msra.mxu0 %v1714_v3  ;;  %1737 = vmatpush1.bf16.msra.mxu1 %v1714_v3  ;;  %v951_v3 = vld [vmem:[%s2766_s21 + $0x38] sm:$0xff]  ;;  %v1012_v34 = vmax.f32 %v996_v6, 0.0 }
 0x369   : > { %1717 = vmatprep.subr.bf16.mxu0 %v1716_v0  ;;  %1730 = vmatprep.subr.bf16.mxu1 %v1716_v0  ;;  %v1004_v0 = vadd.f32 %v2774_v48, %v981_v56  ;;  %v974_v22 = vmul.f32 %v2769_v5, %v951_v3  ;;  %v1021_v5 = vmax.f32 %v1005_v50, 0.0 }
 0x36b   : > { %v1020_v36 = vmax.f32 %v1004_v0, 0.0 }
 0x36c   : > { %1719 = vmatpush1.bf16.msra.mxu0 %v1718_v47  ;;  %1738 = vmatpush1.bf16.msra.mxu1 %v1718_v47  ;;  %v997_v47 = vadd.f32 %v2774_v48, %v974_v22 }
 0x36d   : > { %1721 = vmatprep.subr.bf16.mxu0 %v1720_v62  ;;  %1731 = vmatprep.subr.bf16.mxu1 %v1720_v62  ;;  %v1056_v62 = vlaneseq }
 0x36e   : > { %v1013_v61 = vmax.f32 %v997_v47, 0.0 }
 0x36f   : > { %v1057_v4 = vshrl.u32 %v1056_v62, 7 }
 0x370   : > { %1723 = vmatpush1.bf16.msra.mxu0 %v1722_v13  ;;  %1739 = vmatpush1.bf16.msra.mxu1 %v1722_v13 }
 0x371   : > { %v1058_v48 = vsub.s32 0, %v1057_v4  ;;  %v1062_v7 = vsub.s32 1, %v1057_v4 }
 0x373   : > { %1131 = vmatmul.mubr.f32.vlgmr.msra.gmra.mrb[0].mxu0 %v1006_v16  ;;  %1179 = vmatmul.mubr.f32.vlgmr.msra.gmra.mrb[0].mxu1 %v1014_v17  ;;  %v2834_v8 = vrot.slane %v1054_v1, %v1058_v48  ;;  %v2836_v9 = vrot.slane %v1054_v1, %v1062_v7 }
 0x374   : > { %1136 = vmatprep.mubr.f32.mxu0 %v2223_v25  ;;  %1184 = vmatprep.mubr.f32.mxu1 %v2223_v25 }
 0x377   : > { %1137 = vmatmul.mubr.f32.gmra.mrb[2].mxu0 %v1007_v28  ;;  %1185 = vmatmul.mubr.f32.gmra.mrb[2].mxu1 %v1015_v29 }
 0x378   : > { %1142 = vmatprep.mubr.f32.mxu0 %v2223_v25  ;;  %1190 = vmatprep.mubr.f32.mxu1 %v2223_v25 }
 0x37b   : > { %1143 = vmatmul.mubr.f32.gmra.mrb[4].mxu0 %v1008_v37  ;;  %1191 = vmatmul.mubr.f32.gmra.mrb[4].mxu1 %v1016_v39 }
 0x37c   : > { %1148 = vmatprep.mubr.f32.mxu0 %v2223_v25  ;;  %1196 = vmatprep.mubr.f32.mxu1 %v2223_v25 }
 0x37f   : > { %1149 = vmatmul.mubr.f32.gmra.mrb[6].mxu0 %v1009_v45  ;;  %1197 = vmatmul.mubr.f32.gmra.mrb[6].mxu1 %v1017_v49 }
 0x380   : > { %1154 = vmatprep.mubr.f32.mxu0 %v2223_v25  ;;  %1202 = vmatprep.mubr.f32.mxu1 %v2223_v25 }
 0x383   : > { %1155 = vmatmul.mubr.f32.gmra.mrb[8].mxu0 %v1010_v57  ;;  %1203 = vmatmul.mubr.f32.gmra.mrb[8].mxu1 %v1018_v58 }
 0x384   : > { %1160 = vmatprep.mubr.f32.mxu0 %v2223_v25  ;;  %1208 = vmatprep.mubr.f32.mxu1 %v2223_v25 }
 0x387   : > { %1161 = vmatmul.mubr.f32.gmra.mrb[10].mxu0 %v1011_v19  ;;  %1209 = vmatmul.mubr.f32.gmra.mrb[10].mxu1 %v1019_v20 }
 0x388   : > { %1166 = vmatprep.mubr.f32.mxu0 %v2223_v25  ;;  %1214 = vmatprep.mubr.f32.mxu1 %v2223_v25 }
 0x38b   : > { %1167 = vmatmul.mubr.f32.gmra.mrb[12].mxu0 %v1012_v34  ;;  %1215 = vmatmul.mubr.f32.gmra.mrb[12].mxu1 %v1020_v36 }
 0x38c   : > { %1172 = vmatprep.mubr.f32.mxu0 %v2223_v25  ;;  %1220 = vmatprep.mubr.f32.mxu1 %v2223_v25 }
 0x38f   : > { %1173 = vmatmul.mubr.f32.gmra.mrb[14].mxu0 %v1013_v61  ;;  %1221 = vmatmul.mubr.f32.gmra.mrb[14].mxu1 %v1021_v5 }
 0x446   : > { %v1132_v10 = vpop.f32.mrb[0].mxu0  ;;  %v1180_v11 = vpop.f32.mrb[0].mxu1 }
 0x447   : > { %v1133_v12 = vadd.f32 %v1132_v10, %v2834_v8  ;;  %v1181_v25 = vadd.f32 %v1180_v11, %v2834_v8  ;;  %v1134_v13 = vpop.f32.mrb[1].mxu0  ;;  %v1182_v14 = vpop.f32.mrb[1].mxu1 }
 0x448   : > { %v1135_v15 = vadd.f32 %v1134_v13, %v2836_v9  ;;  %v1183_v16 = vadd.f32 %v1182_v14, %v2836_v9 }
 0x449   : > { %1227 = vst [vmem:[%s2579_s11] sm:$0xff] %v1133_v12  ;;  %1243 = vst [vmem:[%s2579_s11 + $0x80] sm:$0xff] %v1181_v25 }
 0x44a   : > { %1228 = vst [vmem:[%s2579_s11 + $0x8] sm:$0xff] %v1135_v15  ;;  %1244 = vst [vmem:[%s2579_s11 + $0x88] sm:$0xff] %v1183_v16  ;;  %v1138_v17 = vpop.f32.mrb[2].mxu0  ;;  %v1186_v18 = vpop.f32.mrb[2].mxu1 }
 0x44b   : > { %v1139_v21 = vadd.f32 %v1138_v17, %v2834_v8  ;;  %v1187_v23 = vadd.f32 %v1186_v18, %v2834_v8  ;;  %v1140_v24 = vpop.f32.mrb[3].mxu0  ;;  %v1188_v26 = vpop.f32.mrb[3].mxu1 }
 0x44c   : > { %v1141_v27 = vadd.f32 %v1140_v24, %v2836_v9  ;;  %v1189_v28 = vadd.f32 %v1188_v26, %v2836_v9 }
 0x44d   : > { %1229 = vst [vmem:[%s2579_s11 + $0x10] sm:$0xff] %v1139_v21  ;;  %1245 = vst [vmem:[%s2579_s11 + $0x90] sm:$0xff] %v1187_v23 }
 0x44e   : > { %1230 = vst [vmem:[%s2579_s11 + $0x18] sm:$0xff] %v1141_v27  ;;  %1246 = vst [vmem:[%s2579_s11 + $0x98] sm:$0xff] %v1189_v28  ;;  %v1144_v29 = vpop.f32.mrb[4].mxu0  ;;  %v1192_v30 = vpop.f32.mrb[4].mxu1 }
 0x44f   : > { %v1145_v31 = vadd.f32 %v1144_v29, %v2834_v8  ;;  %v1193_v32 = vadd.f32 %v1192_v30, %v2834_v8  ;;  %v1146_v35 = vpop.f32.mrb[5].mxu0  ;;  %v1194_v37 = vpop.f32.mrb[5].mxu1 }
 0x450   : > { %v1147_v38 = vadd.f32 %v1146_v35, %v2836_v9  ;;  %v1195_v39 = vadd.f32 %v1194_v37, %v2836_v9 }
 0x451   : > { %1231 = vst [vmem:[%s2579_s11 + $0x20] sm:$0xff] %v1145_v31  ;;  %1247 = vst [vmem:[%s2579_s11 + $0xa0] sm:$0xff] %v1193_v32 }
 0x452   : > { %1232 = vst [vmem:[%s2579_s11 + $0x28] sm:$0xff] %v1147_v38  ;;  %1248 = vst [vmem:[%s2579_s11 + $0xa8] sm:$0xff] %v1195_v39  ;;  %v1150_v40 = vpop.f32.mrb[6].mxu0  ;;  %v1198_v41 = vpop.f32.mrb[6].mxu1 }
 0x453   : > { %v1151_v42 = vadd.f32 %v1150_v40, %v2834_v8  ;;  %v1199_v43 = vadd.f32 %v1198_v41, %v2834_v8  ;;  %v1152_v44 = vpop.f32.mrb[7].mxu0  ;;  %v1200_v45 = vpop.f32.mrb[7].mxu1 }
 0x454   : > { %v1153_v46 = vadd.f32 %v1152_v44, %v2836_v9  ;;  %v1201_v49 = vadd.f32 %v1200_v45, %v2836_v9 }
 0x455   : > { %1233 = vst [vmem:[%s2579_s11 + $0x30] sm:$0xff] %v1151_v42  ;;  %1249 = vst [vmem:[%s2579_s11 + $0xb0] sm:$0xff] %v1199_v43 }
 0x456   : > { %1234 = vst [vmem:[%s2579_s11 + $0x38] sm:$0xff] %v1153_v46  ;;  %1250 = vst [vmem:[%s2579_s11 + $0xb8] sm:$0xff] %v1201_v49  ;;  %v1156_v51 = vpop.f32.mrb[8].mxu0  ;;  %v1204_v52 = vpop.f32.mrb[8].mxu1 }
 0x457   : > { %v1157_v53 = vadd.f32 %v1156_v51, %v2834_v8  ;;  %v1205_v54 = vadd.f32 %v1204_v52, %v2834_v8  ;;  %v1158_v55 = vpop.f32.mrb[9].mxu0  ;;  %v1206_v2 = vpop.f32.mrb[9].mxu1 }
 0x458   : > { %v1159_v56 = vadd.f32 %v1158_v55, %v2836_v9  ;;  %v1207_v57 = vadd.f32 %v1206_v2, %v2836_v9 }
 0x459   : > { %1235 = vst [vmem:[%s2579_s11 + $0x40] sm:$0xff] %v1157_v53  ;;  %1251 = vst [vmem:[%s2579_s11 + $0xc0] sm:$0xff] %v1205_v54 }
 0x45a   : > { %1236 = vst [vmem:[%s2579_s11 + $0x48] sm:$0xff] %v1159_v56  ;;  %1252 = vst [vmem:[%s2579_s11 + $0xc8] sm:$0xff] %v1207_v57  ;;  %v1162_v58 = vpop.f32.mrb[10].mxu0  ;;  %v1210_v59 = vpop.f32.mrb[10].mxu1 }
 0x45b   : > { %v1163_v60 = vadd.f32 %v1162_v58, %v2834_v8  ;;  %v1211_v3 = vadd.f32 %v1210_v59, %v2834_v8  ;;  %v1164_v63 = vpop.f32.mrb[11].mxu0  ;;  %v1212_v6 = vpop.f32.mrb[11].mxu1 }
 0x45c   : > { %v1165_v0 = vadd.f32 %v1164_v63, %v2836_v9  ;;  %v1213_v19 = vadd.f32 %v1212_v6, %v2836_v9 }
 0x45d   : > { %1237 = vst [vmem:[%s2579_s11 + $0x50] sm:$0xff] %v1163_v60  ;;  %1253 = vst [vmem:[%s2579_s11 + $0xd0] sm:$0xff] %v1211_v3 }
 0x45e   : > { %1238 = vst [vmem:[%s2579_s11 + $0x58] sm:$0xff] %v1165_v0  ;;  %1254 = vst [vmem:[%s2579_s11 + $0xd8] sm:$0xff] %v1213_v19  ;;  %v1168_v20 = vpop.f32.mrb[12].mxu0  ;;  %v1216_v22 = vpop.f32.mrb[12].mxu1 }
 0x45f   : > { %v1169_v33 = vadd.f32 %v1168_v20, %v2834_v8  ;;  %v1217_v34 = vadd.f32 %v1216_v22, %v2834_v8  ;;  %v1170_v36 = vpop.f32.mrb[13].mxu0  ;;  %v1218_v47 = vpop.f32.mrb[13].mxu1 }
 0x460   : > { %v1171_v50 = vadd.f32 %v1170_v36, %v2836_v9  ;;  %v1219_v61 = vadd.f32 %v1218_v47, %v2836_v9 }
 0x461   : > { %1239 = vst [vmem:[%s2579_s11 + $0x60] sm:$0xff] %v1169_v33  ;;  %1255 = vst [vmem:[%s2579_s11 + $0xe0] sm:$0xff] %v1217_v34 }
 0x462   : > { %1240 = vst [vmem:[%s2579_s11 + $0x68] sm:$0xff] %v1171_v50  ;;  %1256 = vst [vmem:[%s2579_s11 + $0xe8] sm:$0xff] %v1219_v61  ;;  %v1174_v5 = vpop.f32.mrb[14].mxu0  ;;  %v1222_v62 = vpop.f32.mrb[14].mxu1 }
 0x463   : > { %v1175_v4 = vadd.f32 %v1174_v5, %v2834_v8  ;;  %v1223_v48 = vadd.f32 %v1222_v62, %v2834_v8  ;;  %v1176_v1 = vpop.f32.mrb[15].mxu0  ;;  %v1224_v7 = vpop.f32.mrb[15].mxu1 }
 0x464   : > { %v1177_v10 = vadd.f32 %v1176_v1, %v2836_v9  ;;  %v1225_v11 = vadd.f32 %v1224_v7, %v2836_v9 }
 0x465   : > { %1241 = vst [vmem:[%s2579_s11 + $0x70] sm:$0xff] %v1175_v4  ;;  %1257 = vst [vmem:[%s2579_s11 + $0xf0] sm:$0xff] %v1223_v48 }
 0x466   : > { %1242 = vst [vmem:[%s2579_s11 + $0x78] sm:$0xff] %v1177_v10  ;;  %1258 = vst [vmem:[%s2579_s11 + $0xf8] sm:$0xff] %v1225_v11 }
 0x467 PF: > { %s2904_s14 = scalar_lea.sflag [#allocation9], %s365_s6  ;;  %p3039_p3 = scmp.ne.s32.totalorder %s3020_s28, 0 }
 0x468   : > { %s3040_s8 = sld [smem:[#allocation27_spill]] (%p3039_p3)  ;;  %s3041_s17 = sld [smem:[#allocation26_spill]] (%p3039_p3) }
 0x469   : > { %1266 = sbr.rel (!%p3039_p3) target bundleno = 1169 (0x491), region = 88 }
 0x46e   : > { %s1267_s19 = smul.u32 (%p3039_p3), %s3041_s17, %s3040_s8 }
 0x470   : > { %s1486_s27 = sshll.u32 %s1267_s19, 4 }
 0x471   : > { %s1269_s13 = ssub.s32 25, %s1486_s27 }
 0x472   : > { %p1270_p6 = scmp.lt.s32.totalorder %s1269_s13, 16 }
 0x474   : > { %s3067_s13 = smov (!%p1270_p6, %s1269_s13), 16 }
 0x475   : > { %s2910_s30 = sshll.u32 %s3067_s13, 8 }
 0x476   : > { %s1275_s24 = ssub.s32 4096, %s2910_s30 }
 0x477   : > { %1276 = vsyncadd %s2904_s14, %s1275_s24  ;;  %p1489_p4 = scmp.ne.s32.totalorder %s2910_s30, 0  ;;  %s1501_s28 = sshll.u32 %s1267_s19, 12 }
 0x478   : > { %s3042_s20 = sld [smem:[#allocation36_spill]]  ;;  %s1282_s16 = sshll.u32 %s2579_s11, 4  ;;  %s2921_s16 = int_to_ptr.vmem [resolvable:$true] %s1282_s16 }
 0x479   : > { %s2070_s15 = scalar_lea.vmem %s2921_s16, %s2910_s30  ;;  %s2224_s29 = smov [#allocation18]  }
 0x47a   : > { %p2071_p11 = scmp.ne.s32.totalorder %s2921_s16, %s2070_s15  ;;  %s2074_s18 = sshll.u32 %s2224_s29, 4  ;;  %s2075_s18 = int_to_ptr.vmem [resolvable:$false] %s2074_s18 }
 0x47b   : > { %s2076_s9 = scalar_lea.vmem %s2075_s18, 8192  ;;  %p2077_p8 = scmp.lt.s32.totalorder %s2921_s16, %s2075_s18 }
 0x47c   : > { %p2072_p0 = pnand %p2071_p11, %p1489_p4  ;;  %p2078_p2 = scmp.lt.s32.totalorder %s2076_s9, %s2070_s15 }
 0x47e   : > { %s2918_s12 = scalar_lea.hbm %s3042_s20, %s1501_s28  ;;  %p2073_p1 = pneg %p2072_p0 }
 0x47f   : > { %p2079_p10 = por %p2078_p2, %p2077_p8 }
 0x481   : > { %p2080_p13 = pnand %p2079_p10, %p2073_p1 }
 0x483   : > { %2083 = shalt.err (!%p2080_p13)
}
 0x484   : > { %s2084_s11 = scalar_lea.hbm %s2918_s12, %s2910_s30  ;;  %s2088_s8 = scalar_lea.hbm %s3042_s20, 6400 }
 0x485   : > { %p2085_p9 = scmp.ne.s32.totalorder %s2918_s12, %s2084_s11  ;;  %p2089_p12 = scmp.lt.u32.totalorder %s2918_s12, %s3042_s20 }
 0x486   : > { %p2090_p3 = scmp.lt.u32.totalorder %s2088_s8, %s2084_s11  ;;  %p2092_p11 = scmp.lt.u32.totalorder %s2084_s11, %s2918_s12 }
 0x487   : > { %p2086_p5 = pnand %p2085_p9, %p1489_p4 }
 0x488   : > { %p2091_p6 = por %p2090_p3, %p2089_p12 }
 0x489   : > { %p2087_p7 = pneg %p2086_p5 }
 0x48a   : > { %p2093_p0 = por %p2092_p11, %p2091_p6 }
 0x48c   : > { %p2094_p1 = pnand %p2093_p0, %p2087_p7 }
 0x48e   : > { %2097 = shalt.err (!%p2094_p1)
}
 0x48f   : > { %s2225_s27 = smov 256   ;;  %s2226_s13 = smov 16  }
 0x490   : > { %1288 = dma.vmem_to_hbm [thread:$0]  (%p1489_p4), %s2921_s16, %s2910_s30, %s2918_s12, %s2904_s14, %s2225_s27, %s2225_s27, %s2226_s13  }
 0x491 PF: > { %s3043_s24 = sld [smem:[#allocation24_spill]]  ;;  %s3044_s28 = sld [smem:[#allocation35_spill]] }
 0x492   : > { %p1792_p8 = scmp.ge.s32.totalorder %s2204_s7, 2 }
 0x497   : > { %s1297_s6 = sand.u32 1, %s3043_s24   ;;  %p3045_p2 = scmp.ne.s32.totalorder %s3044_s28, 0 }
 0x498   : > { %s1298_s10 = scalar_lea.sflag [#allocation9], %s1297_s6 }
 0x499   : > { %p1779_p10 = pnand %p1792_p8, %p3045_p2 }
 0x49b   : > { %2159 = dma.done.wait (!%p1779_p10), %s1298_s10, 4096  }
 0x49c   : > { %2161 = vsyncadd (!%p1779_p10), %s1298_s10, 4294963200  ;;  %s25_s7 = sadd.s32 1, %s2204_s7   ;;  %s3046_s15 = sld [smem:[#allocation25_spill]] }
 0x49d   : > { %p22_p13 = scmp.ge.s32.totalorder %s25_s7, 6   ;;  %s3047_s23 = sld [smem:[#allocation34_spill]] }
 0x49e   : > { %s3048_s14 = sld [smem:[#allocation33_spill]]  ;;  %s3049_s27 = sld [smem:[#allocation28_spill]] }
 0x49f   : > { %s3050_s28 = sld [smem:[#allocation29_spill]]  ;;  %s3051_s29 = sld [smem:[#allocation30_spill]] }
 0x4a0   : > { %s3052_s30 = sld [smem:[#allocation31_spill]]  ;;  %s3053_s21 = smov %s2168_s22 }
 0x4a1   : > { %s3055_s24 = smov %s2180_s25  ;;  %s3056_s25 = smov %s2184_s26 }
 0x4a2   : > { %s3054_s22 = smov %s3046_s15  ;;  %24 = sbr.rel (!%p22_p13) target bundleno = 14 (0xe), region = 127 }
 0x4a4   : > { %s3057_s26 = smov %s3048_s14 }
 0x4a9   :  { %1303 = vsyncpa [#allocation8], 1 }
 0x4aa   :  { %1305 = vsyncpa [#allocation8 + $0x1], 1 }
 0x4ab   :  { %1306 = vsyncpa [#allocation11], 1 }
 0x4ac   :  { %1307 = vsyncpa [#allocation14], 1 }
 0x4ad   :  { %1308 = vsyncpa [#allocation17], 1 }
 0x4ae   :  { %1309 = vsyncpa [#allocation9], 1 }
 0x4af   :  { %1311 = vsyncpa [#allocation9 + $0x1], 1 }

</bundles_post_ra>
